<compile_context>
chip_gen: v5e
topology: v5e:2x2
jax: 0.10.0
libtpu: 0.0.40
codegen_flags: <defaults>
</compile_context>

<pallas_src>
import math
import numpy as np
import jax
import jax.numpy as jnp
from jax import lax
from jax.experimental import pallas as pl
from jax.experimental.pallas import tpu as pltpu

# ---------------- static model hyper-parameters (small, module-consistent) -------------
DIM_A, DIM_B, DIM_C = 32, 32, 16        # mamba_model(dim_a, dim_b, dim_c)
SEQ = 8                                 # sequence length fed to each branch
NUM_LAYER = 2                           # num_layer_a = num_layer_b = 2
NUM_BRANCH = 2                          # branch a and branch b (same dims -> fused grid)

D = DIM_A                               # embeddingdim of a mambalayer (== DIM_B)
D_STATE, D_CONV, EXPAND = 16, 4, 2
D_INNER = EXPAND * D                    # 64
DT_RANK = math.ceil(D / 16)             # 2
HID = 4 * D                             # FFN hidden (mamba_feature_extraction uses 4*emb)
EPS = 1e-5                              # PyTorch LayerNorm default eps
LANES = 128

HDR_IN = DIM_A + DIM_B + DIM_C          # 80
HDR_HID = (DIM_A + DIM_B + DIM_C) // 2  # 40

# ---------------- packed-parameter layout ----------------
# vector slab: (VEC_ROWS, LANES), one parameter vector per sublane row (lane offset 0)
ROW_ANG, ROW_ANB, ROW_FNG, ROW_FNB = 0, 1, 2, 3
ROW_CONVB, ROW_DTB, ROW_DP, ROW_L2B, ROW_L1B = 4, 5, 6, 7, 8
VEC_ROWS = 16

# matrix slab: (MAT_ROWS, LANES), every matrix starts at an 8-aligned sublane offset
OFF_INW = 0                             # in_proj.weight.T   (D, 2*D_INNER) = (32, 128)
OFF_L1W = OFF_INW + D                   # ffn.linear1.T      (D, HID)       = (32, 128)
OFF_L2W = OFF_L1W + D                   # ffn.linear2.T      (HID, D)       = (128, 32)
OFF_OUTW = OFF_L2W + HID                # out_proj.weight.T  (D_INNER, D)   = (64, 32)
OFF_XPW = OFF_OUTW + D_INNER            # x_proj.weight.T    (D_INNER, 34)
OFF_AT = OFF_XPW + D_INNER              # -exp(A_log).T      (D_STATE, D_INNER)
OFF_CONVW = OFF_AT + D_STATE            # depthwise taps     (D_CONV, D_INNER)
OFF_DTW = OFF_CONVW + 8                 # dt_proj.weight.T   (DT_RANK, D_INNER)
OFF_SHIFT = OFF_DTW + 8                 # stacked causal-shift matrix (D_CONV*SEQ, SEQ)
MAT_ROWS = OFF_SHIFT + D_CONV * SEQ     # 384


def _make_shift_const():
    """Stacked causal shift matrix: row block k selects x[r - (D_CONV-1-k)] (0 if <0)."""
    S = np.zeros((D_CONV * SEQ, SEQ), np.float32)
    for k in range(D_CONV):
        s = D_CONV - 1 - k
        for r in range(SEQ):
            if r - s >= 0:
                S[k * SEQ + r, r - s] = 1.0
    return S


_SHIFT_CONST = _make_shift_const()


# ------------------------- in-kernel helpers -------------------------
def _layernorm(v, g, b):
    mu = jnp.mean(v, axis=-1, keepdims=True)
    var = jnp.mean((v - mu) ** 2, axis=-1, keepdims=True)
    return (v - mu) * lax.rsqrt(var + EPS) * g + b


def _silu(x):
    return x * (1.0 / (1.0 + jnp.exp(-x)))


def _softplus(x):
    return jnp.maximum(x, 0.0) + jnp.log(1.0 + jnp.exp(-jnp.abs(x)))


# ------------------------------ branch-stack kernel ------------------------------
def mamba_stack_kernel(x_ref, vec_ref, mat_ref, o_ref, xs_ref, y_ref):
    layer = pl.program_id(1)

    # layer 0 of each branch: load the branch input into the resident activation
    @pl.when(layer == 0)
    def _():
        xs_ref[...] = x_ref[...]

    # ---- unpack the packed parameter slabs (static slices) -------------------
    vecs = vec_ref[...]                                       # (VEC_ROWS, LANES)
    an_g = vecs[ROW_ANG:ROW_ANG + 1, :D]
    an_b = vecs[ROW_ANB:ROW_ANB + 1, :D]
    fn_g = vecs[ROW_FNG:ROW_FNG + 1, :D]
    fn_b = vecs[ROW_FNB:ROW_FNB + 1, :D]
    conv_b = vecs[ROW_CONVB:ROW_CONVB + 1, :D_INNER]
    dt_b = vecs[ROW_DTB:ROW_DTB + 1, :D_INNER]
    Dp = vecs[ROW_DP:ROW_DP + 1, :D_INNER]
    l2_b = vecs[ROW_L2B:ROW_L2B + 1, :D]
    l1_b = vecs[ROW_L1B:ROW_L1B + 1, :HID]

    in_w = mat_ref[OFF_INW:OFF_INW + D, :2 * D_INNER]               # (D, 2*D_INNER)
    l1_w = mat_ref[OFF_L1W:OFF_L1W + D, :HID]                       # (D, HID)
    l2_w = mat_ref[OFF_L2W:OFF_L2W + HID, :D]                       # (HID, D)
    out_w = mat_ref[OFF_OUTW:OFF_OUTW + D_INNER, :D]                # (D_INNER, D)
    xproj_w = mat_ref[OFF_XPW:OFF_XPW + D_INNER, :DT_RANK + 2 * D_STATE]
    negA_T = mat_ref[OFF_AT:OFF_AT + D_STATE, :D_INNER]             # -exp(A_log).T
    conv_w = mat_ref[OFF_CONVW:OFF_CONVW + D_CONV, :D_INNER]        # (D_CONV, D_INNER)
    dt_w = mat_ref[OFF_DTW:OFF_DTW + DT_RANK, :D_INNER]             # (DT_RANK, D_INNER)
    shift = mat_ref[OFF_SHIFT:OFF_SHIFT + D_CONV * SEQ, :SEQ]       # (D_CONV*SEQ, SEQ)

    x = xs_ref[...]                                                 # (SEQ, D)
    residual = x

    # ---------------- atte_norm + Mamba ----------------
    xn = _layernorm(x, an_g, an_b)
    xz = jnp.dot(xn, in_w, preferred_element_type=jnp.float32)      # (SEQ, 2*D_INNER)
    xm = xz[:, :D_INNER]                                            # conv / SSM branch
    z = xz[:, D_INNER:]                                             # gating branch

    # causal depthwise conv1d: one fused MXU dot with the pre-stacked shift matrix,
    # then 4 scaled adds (replaces 4 tiny matmuls + in-kernel iota mask construction)
    shifted = jnp.dot(shift, xm, preferred_element_type=jnp.float32)  # (D_CONV*SEQ, D_INNER)
    conv = conv_b
    for k in range(D_CONV):
        conv = conv + shifted[k * SEQ:(k + 1) * SEQ, :] * conv_w[k:k + 1, :]
    u = _silu(conv)                                                 # (SEQ, D_INNER)

    # x_proj -> (dt, B, C), then dt_proj (+bias as delta_bias) and softplus
    dbl = jnp.dot(u, xproj_w, preferred_element_type=jnp.float32)   # (SEQ, DT_RANK+2*D_STATE)
    dt_low = dbl[:, :DT_RANK]
    Bm = dbl[:, DT_RANK:DT_RANK + D_STATE]
    Cm = dbl[:, DT_RANK + D_STATE:]
    delta = _softplus(jnp.dot(dt_low, dt_w, preferred_element_type=jnp.float32) + dt_b)

    BmT = Bm.T                                                      # (D_STATE, SEQ)
    CmT = Cm.T                                                      # (D_STATE, SEQ)
    du = delta * u                                                  # hoisted out of the scan

    # selective scan: only the h recurrence stays serial; each y row is a VPU multiply
    # + sublane reduce stored straight into VMEM scratch (no masked accumulate, no
    # per-step MXU round-trip).
    h = jnp.zeros((D_STATE, D_INNER), jnp.float32)
    for t in range(SEQ):
        dA = jnp.exp(delta[t:t + 1, :] * negA_T)                    # (D_STATE, D_INNER)
        h = dA * h + BmT[:, t:t + 1] * du[t:t + 1, :]
        y_ref[t:t + 1, :] = jnp.sum(CmT[:, t:t + 1] * h, axis=0, keepdims=True)

    y = (y_ref[...] + u * Dp) * _silu(z)                            # skip term + output gate
    x1 = jnp.dot(y, out_w, preferred_element_type=jnp.float32) + residual

    # ---------------- ffn_norm + FFN (FFN adds its own residual) ----------------
    xn2 = _layernorm(x1, fn_g, fn_b)
    h1 = jnp.maximum(jnp.dot(xn2, l1_w, preferred_element_type=jnp.float32) + l1_b, 0.0)
    ffn = xn2 + jnp.dot(h1, l2_w, preferred_element_type=jnp.float32) + l2_b
    x_new = x1 + ffn

    xs_ref[...] = x_new
    # mamba_feature_extraction's .mean(dim=-2); the resident output block is only
    # flushed to HBM when the branch index changes / the grid ends, so the last
    # layer's value is what lands in HBM.
    o_ref[...] = jnp.mean(x_new, axis=0, keepdims=True)


def mamba_branches_forward(ab_x, vecs, mats):
    return pl.pallas_call(
        mamba_stack_kernel,
        out_shape=jax.ShapeDtypeStruct((NUM_BRANCH, 1, D), jnp.float32),
        grid=(NUM_BRANCH, NUM_LAYER),
        in_specs=[
            pl.BlockSpec((None, SEQ, D), lambda b, l: (b, 0, 0)),
            pl.BlockSpec((None, None, VEC_ROWS, LANES), lambda b, l: (b, l, 0, 0)),
            pl.BlockSpec((None, None, MAT_ROWS, LANES), lambda b, l: (b, l, 0, 0)),
        ],
        out_specs=pl.BlockSpec((None, 1, D), lambda b, l: (b, 0, 0)),
        scratch_shapes=[
            pltpu.VMEM((SEQ, D), jnp.float32),         # running activation across layers
            pltpu.VMEM((SEQ, D_INNER), jnp.float32),   # selective-scan output rows
        ],
        compiler_params=pltpu.CompilerParams(
            dimension_semantics=("parallel", "arbitrary")),
    )(ab_x, vecs, mats)


# ------------------------------ header kernel ------------------------------
def header_kernel(ab_ref, c_ref, w1_ref, b1_ref, w2_ref, b2_ref, o_ref):
    a = ab_ref[0]                                                   # (1, DIM_A)
    b = ab_ref[1]                                                   # (1, DIM_B)
    c = c_ref[...]                                                  # (1, DIM_C)
    # split-weight matmul == Linear(concat([a, b, c]))  (avoids in-kernel lane concat)
    h = (jnp.dot(a, w1_ref[0:DIM_A, :], preferred_element_type=jnp.float32)
         + jnp.dot(b, w1_ref[DIM_A:DIM_A + DIM_B, :], preferred_element_type=jnp.float32)
         + jnp.dot(c, w1_ref[DIM_A + DIM_B:HDR_IN, :], preferred_element_type=jnp.float32)
         + b1_ref[...])
    h = jnp.maximum(h, 0.0)
    out = jnp.dot(h, w2_ref[...], preferred_element_type=jnp.float32) + b2_ref[...]
    o_ref[...] = 1.0 / (1.0 + jnp.exp(-out))


def header_forward(ab_feats, c, w1, b1, w2, b2):
    return pl.pallas_call(
        header_kernel,
        out_shape=jax.ShapeDtypeStruct((1, 1), jnp.float32),
        in_specs=[pl.BlockSpec(memory_space=pltpu.MemorySpace.VMEM)] * 6,
        out_specs=pl.BlockSpec(memory_space=pltpu.MemorySpace.VMEM),
    )(ab_feats, c, w1, b1, w2, b2)


@jax.jit
def mamba_model_forward(ab_x, c, vecs, mats, w1, b1, w2, b2):
    feats = mamba_branches_forward(ab_x, vecs, mats)                # (2, 1, D)
    out = header_forward(feats, c, w1, b1, w2, b2)                  # (1, 1)
    return feats, out


# --------------------- deterministic parameter init + packing -------------------
def init_layer_params(key):
    ks = jax.random.split(key, 11)

    def w(k, shape, scale):
        return (scale * jax.random.normal(k, shape)).astype(jnp.float32)

    p = {}
    p["an_g"] = jnp.ones((D,), jnp.float32)
    p["an_b"] = jnp.zeros((D,), jnp.float32)
    p["fn_g"] = jnp.ones((D,), jnp.float32)
    p["fn_b"] = jnp.zeros((D,), jnp.float32)
    p["in_w"] = w(ks[0], (D, 2 * D_INNER), 0.1)                     # in_proj.weight.T
    p["conv_w"] = w(ks[1], (D_CONV, D_INNER), 0.3)
    p["conv_b"] = w(ks[2], (D_INNER,), 0.1)
    p["xproj_w"] = w(ks[3], (D_INNER, DT_RANK + 2 * D_STATE), 0.1)
    p["dt_w"] = w(ks[4], (DT_RANK, D_INNER), 0.5)
    dt = jnp.exp(jax.random.uniform(ks[5], (D_INNER,), jnp.float32)
                 * (math.log(0.1) - math.log(0.001)) + math.log(0.001))
    p["dt_b"] = (dt + jnp.log(-jnp.expm1(-dt))).astype(jnp.float32)
    A_logT = jnp.log(jnp.tile(
        jnp.arange(1, D_STATE + 1, dtype=jnp.float32)[:, None], (1, D_INNER)))
    p["negA_T"] = (-jnp.exp(A_logT)).astype(jnp.float32)            # host-precomputed
    p["Dp"] = jnp.ones((D_INNER,), jnp.float32)
    p["out_w"] = w(ks[6], (D_INNER, D), 0.1)                        # out_proj.weight.T
    p["l1_w"] = w(ks[7], (D, HID), 0.1)
    p["l1_b"] = w(ks[8], (HID,), 0.1)
    p["l2_w"] = w(ks[9], (HID, D), 0.1)
    p["l2_b"] = w(ks[10], (D,), 0.1)
    return p


def pack_layer_params(p):
    vec = np.zeros((VEC_ROWS, LANES), np.float32)
    vec[ROW_ANG, :D] = np.asarray(p["an_g"])
    vec[ROW_ANB, :D] = np.asarray(p["an_b"])
    vec[ROW_FNG, :D] = np.asarray(p["fn_g"])
    vec[ROW_FNB, :D] = np.asarray(p["fn_b"])
    vec[ROW_CONVB, :D_INNER] = np.asarray(p["conv_b"])
    vec[ROW_DTB, :D_INNER] = np.asarray(p["dt_b"])
    vec[ROW_DP, :D_INNER] = np.asarray(p["Dp"])
    vec[ROW_L2B, :D] = np.asarray(p["l2_b"])
    vec[ROW_L1B, :HID] = np.asarray(p["l1_b"])

    mat = np.zeros((MAT_ROWS, LANES), np.float32)
    mat[OFF_INW:OFF_INW + D, :2 * D_INNER] = np.asarray(p["in_w"])
    mat[OFF_L1W:OFF_L1W + D, :HID] = np.asarray(p["l1_w"])
    mat[OFF_L2W:OFF_L2W + HID, :D] = np.asarray(p["l2_w"])
    mat[OFF_OUTW:OFF_OUTW + D_INNER, :D] = np.asarray(p["out_w"])
    mat[OFF_XPW:OFF_XPW + D_INNER, :DT_RANK + 2 * D_STATE] = np.asarray(p["xproj_w"])
    mat[OFF_AT:OFF_AT + D_STATE, :D_INNER] = np.asarray(p["negA_T"])
    mat[OFF_CONVW:OFF_CONVW + D_CONV, :D_INNER] = np.asarray(p["conv_w"])
    mat[OFF_DTW:OFF_DTW + DT_RANK, :D_INNER] = np.asarray(p["dt_w"])
    mat[OFF_SHIFT:OFF_SHIFT + D_CONV * SEQ, :SEQ] = _SHIFT_CONST
    return vec, mat


def pack_branches(branch_params):
    vecs = np.zeros((NUM_BRANCH, NUM_LAYER, VEC_ROWS, LANES), np.float32)
    mats = np.zeros((NUM_BRANCH, NUM_LAYER, MAT_ROWS, LANES), np.float32)
    for bi, layers in enumerate(branch_params):
        for li, p in enumerate(layers):
            v, m = pack_layer_params(p)
            vecs[bi, li] = v
            mats[bi, li] = m
    return jnp.asarray(vecs), jnp.asarray(mats)


# --------------------- pure-JAX reference (for checking) ---------------------
def reference_mambalayer(x, p):
    def ln(v, g, b):
        mu = v.mean(-1, keepdims=True)
        var = ((v - mu) ** 2).mean(-1, keepdims=True)
        return (v - mu) / jnp.sqrt(var + EPS) * g + b

    residual = x
    xn = ln(x, p["an_g"], p["an_b"])
    xz = xn @ p["in_w"]
    xm, z = xz[:, :D_INNER], xz[:, D_INNER:]
    xm_pad = jnp.pad(xm, ((D_CONV - 1, 0), (0, 0)))
    conv = sum(xm_pad[k:k + SEQ] * p["conv_w"][k:k + 1] for k in range(D_CONV)) + p["conv_b"]
    u = conv * jax.nn.sigmoid(conv)
    dbl = u @ p["xproj_w"]
    dt_low = dbl[:, :DT_RANK]
    Bm = dbl[:, DT_RANK:DT_RANK + D_STATE]
    Cm = dbl[:, DT_RANK + D_STATE:]
    delta = jax.nn.softplus(dt_low @ p["dt_w"] + p["dt_b"])
    A = p["negA_T"].T                                               # (D_INNER, D_STATE)

    def step(h, inp):
        d, bb, cc, uu = inp
        dA = jnp.exp(d[:, None] * A)
        dBu = d[:, None] * bb[None, :] * uu[:, None]
        h = dA * h + dBu
        return h, (h * cc[None, :]).sum(-1)

    _, ys = lax.scan(step, jnp.zeros((D_INNER, D_STATE), jnp.float32),
                     (delta, Bm, Cm, u))
    y = ys + u * p["Dp"]
    y = y * (z * jax.nn.sigmoid(z))
    x1 = y @ p["out_w"] + residual
    xn2 = ln(x1, p["fn_g"], p["fn_b"])
    ffn = xn2 + (jnp.maximum(xn2 @ p["l1_w"] + p["l1_b"], 0.0) @ p["l2_w"] + p["l2_b"])
    return x1 + ffn


def reference_model(a, b, c, branch_params, w1, b1, w2, b2):
    def branch(x, layers):
        for p in layers:
            x = reference_mambalayer(x, p)
        return x.mean(axis=-2)                                      # .mean(dim=-2)

    fa = branch(a, branch_params[0])
    fb = branch(b, branch_params[1])
    cat = jnp.concatenate([fa, fb, c.reshape(-1)], axis=-1)[None, :]  # (1, HDR_IN)
    h = jnp.maximum(cat @ w1 + b1, 0.0)
    out = jax.nn.sigmoid(h @ w2 + b2)
    feats = jnp.stack([fa, fb], axis=0)[:, None, :]                 # (2, 1, D)
    return feats, out


if __name__ == "__main__":
    root = jax.random.PRNGKey(0)
    k_a, k_b, k_c, k_pa, k_pb, k_h = jax.random.split(root, 6)

    a = jax.random.normal(k_a, (SEQ, DIM_A), jnp.float32)
    b = jax.random.normal(k_b, (SEQ, DIM_B), jnp.float32)
    c = jax.random.normal(k_c, (1, DIM_C), jnp.float32)

    branch_params = [
        [init_layer_params(k) for k in jax.random.split(k_pa, NUM_LAYER)],
        [init_layer_params(k) for k in jax.random.split(k_pb, NUM_LAYER)],
    ]
    kh = jax.random.split(k_h, 4)
    hdr_w1 = (0.1 * jax.random.normal(kh[0], (HDR_IN, HDR_HID))).astype(jnp.float32)
    hdr_b1 = (0.1 * jax.random.normal(kh[1], (1, HDR_HID))).astype(jnp.float32)
    hdr_w2 = (0.1 * jax.random.normal(kh[2], (HDR_HID, 1))).astype(jnp.float32)
    hdr_b2 = (0.1 * jax.random.normal(kh[3], (1, 1))).astype(jnp.float32)

    vecs, mats = pack_branches(branch_params)
    ab_x = jnp.stack([a, b], axis=0)                                # (2, SEQ, D)

    feats, out = mamba_model_forward(ab_x, c, vecs, mats,
                                     hdr_w1, hdr_b1, hdr_w2, hdr_b2)
    feats = jax.block_until_ready(feats)
    out = jax.block_until_ready(out)

    ref_feats, ref_out = reference_model(a, b, c, branch_params,
                                         hdr_w1, hdr_b1, hdr_w2, hdr_b2)
    # tightened from 2e-2 (per review); f32-only kernel, leaves headroom for EUP approx.
    np.testing.assert_allclose(np.asarray(feats), np.asarray(ref_feats),
                               rtol=1e-3, atol=1e-4)
    np.testing.assert_allclose(np.asarray(out), np.asarray(ref_out),
                               rtol=1e-3, atol=1e-4)
    print("KERNEL_OK")
</pallas_src>

<mosaic_0001>
module attributes {stable_mosaic.version = 11 : i64} {
  func.func @header_kernel(%arg0: memref<2x1x32xf32, #tpu.memory_space<vmem>>, %arg1: memref<1x16xf32, #tpu.memory_space<vmem>>, %arg2: memref<80x40xf32, #tpu.memory_space<vmem>>, %arg3: memref<1x40xf32, #tpu.memory_space<vmem>>, %arg4: memref<40x1xf32, #tpu.memory_space<vmem>>, %arg5: memref<1x1xf32, #tpu.memory_space<vmem>>, %arg6: memref<1x1xf32, #tpu.memory_space<vmem>>) attributes {dimension_semantics = [], scalar_prefetch = 0 : i64, scratch_operands = 0 : i64, tpu.core_type = #tpu.core_type<tc>} {
    %c0 = arith.constant 0 : index
    %c0_0 = arith.constant 0 : index
    %c0_1 = arith.constant 0 : index
    %0 = vector.load %arg0[%c0, %c0_0, %c0_1] : memref<2x1x32xf32, #tpu.memory_space<vmem>>, vector<1x1x32xf32>
    %1 = vector.shape_cast %0 : vector<1x1x32xf32> to vector<1x32xf32>
    %c1 = arith.constant 1 : index
    %c0_2 = arith.constant 0 : index
    %c0_3 = arith.constant 0 : index
    %2 = vector.load %arg0[%c1, %c0_2, %c0_3] : memref<2x1x32xf32, #tpu.memory_space<vmem>>, vector<1x1x32xf32>
    %3 = vector.shape_cast %2 : vector<1x1x32xf32> to vector<1x32xf32>
    %c0_4 = arith.constant 0 : index
    %c0_5 = arith.constant 0 : index
    %4 = vector.load %arg1[%c0_4, %c0_5] : memref<1x16xf32, #tpu.memory_space<vmem>>, vector<1x16xf32>
    %c0_6 = arith.constant 0 : index
    %c0_7 = arith.constant 0 : index
    %5 = vector.load %arg2[%c0_6, %c0_7] : memref<80x40xf32, #tpu.memory_space<vmem>>, vector<32x40xf32>
    %cst = arith.constant dense<0.000000e+00> : vector<1x40xf32>
    %6 = tpu.matmul %1, %5, %cst {dimension_numbers = #tpu.dot_dimension_numbers<[1], [0], [0], [1], [0, 0, 1, 1], [], []>} : vector<1x32xf32>, vector<32x40xf32>, vector<1x40xf32> -> vector<1x40xf32>
    %c32 = arith.constant 32 : index
    %c0_8 = arith.constant 0 : index
    %7 = vector.load %arg2[%c32, %c0_8] : memref<80x40xf32, #tpu.memory_space<vmem>>, vector<32x40xf32>
    %cst_9 = arith.constant dense<0.000000e+00> : vector<1x40xf32>
    %8 = tpu.matmul %3, %7, %cst_9 {dimension_numbers = #tpu.dot_dimension_numbers<[1], [0], [0], [1], [0, 0, 1, 1], [], []>} : vector<1x32xf32>, vector<32x40xf32>, vector<1x40xf32> -> vector<1x40xf32>
    %9 = arith.addf %6, %8 : vector<1x40xf32>
    %c64 = arith.constant 64 : index
    %c0_10 = arith.constant 0 : index
    %10 = vector.load %arg2[%c64, %c0_10] : memref<80x40xf32, #tpu.memory_space<vmem>>, vector<16x40xf32>
    %cst_11 = arith.constant dense<0.000000e+00> : vector<1x40xf32>
    %11 = tpu.matmul %4, %10, %cst_11 {dimension_numbers = #tpu.dot_dimension_numbers<[1], [0], [0], [1], [0, 0, 1, 1], [], []>} : vector<1x16xf32>, vector<16x40xf32>, vector<1x40xf32> -> vector<1x40xf32>
    %12 = arith.addf %9, %11 : vector<1x40xf32>
    %c0_12 = arith.constant 0 : index
    %c0_13 = arith.constant 0 : index
    %13 = vector.load %arg3[%c0_12, %c0_13] : memref<1x40xf32, #tpu.memory_space<vmem>>, vector<1x40xf32>
    %14 = arith.addf %12, %13 : vector<1x40xf32>
    %cst_14 = arith.constant 0.000000e+00 : f32
    %15 = vector.broadcast %cst_14 : f32 to vector<1x40xf32>
    %16 = arith.maximumf %14, %15 : vector<1x40xf32>
    %c0_15 = arith.constant 0 : index
    %c0_16 = arith.constant 0 : index
    %17 = vector.load %arg4[%c0_15, %c0_16] : memref<40x1xf32, #tpu.memory_space<vmem>>, vector<40x1xf32>
    %cst_17 = arith.constant dense<0.000000e+00> : vector<1x1xf32>
    %18 = tpu.matmul %16, %17, %cst_17 {dimension_numbers = #tpu.dot_dimension_numbers<[1], [0], [0], [1], [0, 0, 1, 1], [], []>} : vector<1x40xf32>, vector<40x1xf32>, vector<1x1xf32> -> vector<1x1xf32>
    %c0_18 = arith.constant 0 : index
    %c0_19 = arith.constant 0 : index
    %19 = vector.load %arg5[%c0_18, %c0_19] : memref<1x1xf32, #tpu.memory_space<vmem>>, vector<1x1xf32>
    %20 = arith.addf %18, %19 : vector<1x1xf32>
    %cst_20 = arith.constant 0.000000e+00 : f32
    %21 = vector.broadcast %cst_20 : f32 to vector<1x1xf32>
    %22 = arith.subf %21, %20 : vector<1x1xf32>
    %23 = math.exp %22 : vector<1x1xf32>
    %cst_21 = arith.constant 1.000000e+00 : f32
    %24 = vector.broadcast %cst_21 : f32 to vector<1x1xf32>
    %25 = arith.addf %24, %23 : vector<1x1xf32>
    %cst_22 = arith.constant 1.000000e+00 : f32
    %26 = vector.broadcast %cst_22 : f32 to vector<1x1xf32>
    %27 = arith.divf %26, %25 : vector<1x1xf32>
    %c0_23 = arith.constant 0 : index
    %c0_24 = arith.constant 0 : index
    %28 = vector.load %arg6[%c0_23, %c0_24] : memref<1x1xf32, #tpu.memory_space<vmem>>, vector<1x1xf32>
    tpu.vector_store %arg6[%c0_23, %c0_24], %27 {strides = array<i32>} : memref<1x1xf32, #tpu.memory_space<vmem>>, vector<1x1xf32>,
    return
  }
}

module attributes {stable_mosaic.version = 11 : i64} {
  func.func @mamba_stack_kernel(%arg0: i32, %arg1: i32, %arg2: memref<1x8x32xf32, #tpu.memory_space<vmem>>, %arg3: memref<1x1x16x128xf32, #tpu.memory_space<vmem>>, %arg4: memref<1x1x384x128xf32, #tpu.memory_space<vmem>>, %arg5: memref<1x1x32xf32, #tpu.memory_space<vmem>>, %arg6: memref<8x32xf32, #tpu.memory_space<vmem>>, %arg7: memref<8x64xf32, #tpu.memory_space<vmem>>) attributes {dimension_semantics = [#tpu.dimension_semantics<parallel>, #tpu.dimension_semantics<arbitrary>], iteration_bounds = array<i64: 2, 2>, scalar_prefetch = 0 : i64, scratch_operands = 2 : i64, tpu.core_type = #tpu.core_type<tc>, window_params = [{transform_indices = @transform_0, window_bounds = array<i64: 1, 8, 32>}, {transform_indices = @transform_1, window_bounds = array<i64: 1, 1, 16, 128>}, {transform_indices = @transform_2, window_bounds = array<i64: 1, 1, 384, 128>}, {transform_indices = @transform_3, window_bounds = array<i64: 1, 1, 32>}]} {
    %c0_i32 = arith.constant 0 : i32
    %0 = arith.cmpi eq, %arg1, %c0_i32 : i32
    %1 = arith.extui %0 : i1 to i32
    %c0_i32_0 = arith.constant 0 : i32
    %2 = arith.cmpi ne, %1, %c0_i32_0 : i32
    scf.if %2 {
      %c0_87 = arith.constant 0 : index
      %c0_88 = arith.constant 0 : index
      %c0_89 = arith.constant 0 : index
      %300 = vector.load %arg2[%c0_87, %c0_88, %c0_89] : memref<1x8x32xf32, #tpu.memory_space<vmem>>, vector<1x8x32xf32>
      %301 = vector.shape_cast %300 : vector<1x8x32xf32> to vector<8x32xf32>
      %c0_90 = arith.constant 0 : index
      %c0_91 = arith.constant 0 : index
      %302 = vector.load %arg6[%c0_90, %c0_91] : memref<8x32xf32, #tpu.memory_space<vmem>>, vector<8x32xf32>
      tpu.vector_store %arg6[%c0_90, %c0_91], %301 {strides = array<i32>} : memref<8x32xf32, #tpu.memory_space<vmem>>, vector<8x32xf32>,
    } else {
    }
    %c0 = arith.constant 0 : index
    %c0_1 = arith.constant 0 : index
    %c0_2 = arith.constant 0 : index
    %c0_3 = arith.constant 0 : index
    %3 = vector.load %arg3[%c0, %c0_1, %c0_2, %c0_3] : memref<1x1x16x128xf32, #tpu.memory_space<vmem>>, vector<1x1x16x128xf32>
    %4 = vector.shape_cast %3 : vector<1x1x16x128xf32> to vector<16x128xf32>
    %5 = vector.extract_strided_slice %4 {offsets = [0, 0], sizes = [1, 32], strides = [1, 1]} : vector<16x128xf32> to vector<1x32xf32>
    %6 = vector.extract_strided_slice %4 {offsets = [1, 0], sizes = [1, 32], strides = [1, 1]} : vector<16x128xf32> to vector<1x32xf32>
    %7 = vector.extract_strided_slice %4 {offsets = [2, 0], sizes = [1, 32], strides = [1, 1]} : vector<16x128xf32> to vector<1x32xf32>
    %8 = vector.extract_strided_slice %4 {offsets = [3, 0], sizes = [1, 32], strides = [1, 1]} : vector<16x128xf32> to vector<1x32xf32>
    %9 = vector.extract_strided_slice %4 {offsets = [4, 0], sizes = [1, 64], strides = [1, 1]} : vector<16x128xf32> to vector<1x64xf32>
    %10 = vector.extract_strided_slice %4 {offsets = [5, 0], sizes = [1, 64], strides = [1, 1]} : vector<16x128xf32> to vector<1x64xf32>
    %11 = vector.extract_strided_slice %4 {offsets = [6, 0], sizes = [1, 64], strides = [1, 1]} : vector<16x128xf32> to vector<1x64xf32>
    %12 = vector.extract_strided_slice %4 {offsets = [7, 0], sizes = [1, 32], strides = [1, 1]} : vector<16x128xf32> to vector<1x32xf32>
    %13 = vector.extract_strided_slice %4 {offsets = [8, 0], sizes = [1, 128], strides = [1, 1]} : vector<16x128xf32> to vector<1x128xf32>
    %c0_4 = arith.constant 0 : index
    %c0_5 = arith.constant 0 : index
    %c0_6 = arith.constant 0 : index
    %c0_7 = arith.constant 0 : index
    %14 = vector.load %arg4[%c0_4, %c0_5, %c0_6, %c0_7] : memref<1x1x384x128xf32, #tpu.memory_space<vmem>>, vector<1x1x32x128xf32>
    %15 = vector.shape_cast %14 : vector<1x1x32x128xf32> to vector<32x128xf32>
    %c0_8 = arith.constant 0 : index
    %c0_9 = arith.constant 0 : index
    %c32 = arith.constant 32 : index
    %c0_10 = arith.constant 0 : index
    %16 = vector.load %arg4[%c0_8, %c0_9, %c32, %c0_10] : memref<1x1x384x128xf32, #tpu.memory_space<vmem>>, vector<1x1x32x128xf32>
    %17 = vector.shape_cast %16 : vector<1x1x32x128xf32> to vector<32x128xf32>
    %c0_11 = arith.constant 0 : index
    %c0_12 = arith.constant 0 : index
    %c64 = arith.constant 64 : index
    %c0_13 = arith.constant 0 : index
    %18 = vector.load %arg4[%c0_11, %c0_12, %c64, %c0_13] : memref<1x1x384x128xf32, #tpu.memory_space<vmem>>, vector<1x1x128x32xf32>
    %19 = vector.shape_cast %18 : vector<1x1x128x32xf32> to vector<128x32xf32>
    %c0_14 = arith.constant 0 : index
    %c0_15 = arith.constant 0 : index
    %c192 = arith.constant 192 : index
    %c0_16 = arith.constant 0 : index
    %20 = vector.load %arg4[%c0_14, %c0_15, %c192, %c0_16] : memref<1x1x384x128xf32, #tpu.memory_space<vmem>>, vector<1x1x64x32xf32>
    %21 = vector.shape_cast %20 : vector<1x1x64x32xf32> to vector<64x32xf32>
    %c0_17 = arith.constant 0 : index
    %c0_18 = arith.constant 0 : index
    %c256 = arith.constant 256 : index
    %c0_19 = arith.constant 0 : index
    %22 = vector.load %arg4[%c0_17, %c0_18, %c256, %c0_19] : memref<1x1x384x128xf32, #tpu.memory_space<vmem>>, vector<1x1x64x34xf32>
    %23 = vector.shape_cast %22 : vector<1x1x64x34xf32> to vector<64x34xf32>
    %c0_20 = arith.constant 0 : index
    %c0_21 = arith.constant 0 : index
    %c320 = arith.constant 320 : index
    %c0_22 = arith.constant 0 : index
    %24 = vector.load %arg4[%c0_20, %c0_21, %c320, %c0_22] : memref<1x1x384x128xf32, #tpu.memory_space<vmem>>, vector<1x1x16x64xf32>
    %25 = vector.shape_cast %24 : vector<1x1x16x64xf32> to vector<16x64xf32>
    %c0_23 = arith.constant 0 : index
    %c0_24 = arith.constant 0 : index
    %c336 = arith.constant 336 : index
    %c0_25 = arith.constant 0 : index
    %26 = vector.load %arg4[%c0_23, %c0_24, %c336, %c0_25] : memref<1x1x384x128xf32, #tpu.memory_space<vmem>>, vector<1x1x4x64xf32>
    %27 = vector.shape_cast %26 : vector<1x1x4x64xf32> to vector<4x64xf32>
    %c0_26 = arith.constant 0 : index
    %c0_27 = arith.constant 0 : index
    %c344 = arith.constant 344 : index
    %c0_28 = arith.constant 0 : index
    %28 = vector.load %arg4[%c0_26, %c0_27, %c344, %c0_28] : memref<1x1x384x128xf32, #tpu.memory_space<vmem>>, vector<1x1x2x64xf32>
    %29 = vector.shape_cast %28 : vector<1x1x2x64xf32> to vector<2x64xf32>
    %c0_29 = arith.constant 0 : index
    %c0_30 = arith.constant 0 : index
    %c352 = arith.constant 352 : index
    %c0_31 = arith.constant 0 : index
    %30 = vector.load %arg4[%c0_29, %c0_30, %c352, %c0_31] : memref<1x1x384x128xf32, #tpu.memory_space<vmem>>, vector<1x1x32x8xf32>
    %31 = vector.shape_cast %30 : vector<1x1x32x8xf32> to vector<32x8xf32>
    %c0_32 = arith.constant 0 : index
    %c0_33 = arith.constant 0 : index
    %32 = vector.load %arg6[%c0_32, %c0_33] : memref<8x32xf32, #tpu.memory_space<vmem>>, vector<8x32xf32>
    %cst = arith.constant dense<0.000000e+00> : vector<8xf32>
    %33 = vector.multi_reduction <add>, %32, %cst [1] : vector<8x32xf32> to vector<8xf32>
    %34 = vector.shape_cast %33 : vector<8xf32> to vector<8x1xf32>
    %cst_34 = arith.constant 3.200000e+01 : f32
    %35 = vector.broadcast %cst_34 : f32 to vector<8x1xf32>
    %36 = arith.divf %34, %35 : vector<8x1xf32>
    %37 = vector.broadcast %36 : vector<8x1xf32> to vector<8x32xf32>
    %38 = arith.subf %32, %37 : vector<8x32xf32>
    %39 = arith.mulf %38, %38 : vector<8x32xf32>
    %cst_35 = arith.constant dense<0.000000e+00> : vector<8xf32>
    %40 = vector.multi_reduction <add>, %39, %cst_35 [1] : vector<8x32xf32> to vector<8xf32>
    %41 = vector.shape_cast %40 : vector<8xf32> to vector<8x1xf32>
    %cst_36 = arith.constant 3.200000e+01 : f32
    %42 = vector.broadcast %cst_36 : f32 to vector<8x1xf32>
    %43 = arith.divf %41, %42 : vector<8x1xf32>
    %44 = vector.broadcast %36 : vector<8x1xf32> to vector<8x32xf32>
    %45 = arith.subf %32, %44 : vector<8x32xf32>
    %cst_37 = arith.constant 9.99999974E-6 : f32
    %46 = vector.broadcast %cst_37 : f32 to vector<8x1xf32>
    %47 = arith.addf %43, %46 : vector<8x1xf32>
    %48 = math.rsqrt %47 : vector<8x1xf32>
    %49 = vector.broadcast %48 : vector<8x1xf32> to vector<8x32xf32>
    %50 = arith.mulf %45, %49 : vector<8x32xf32>
    %51 = vector.broadcast %5 : vector<1x32xf32> to vector<8x32xf32>
    %52 = arith.mulf %50, %51 : vector<8x32xf32>
    %53 = vector.broadcast %6 : vector<1x32xf32> to vector<8x32xf32>
    %54 = arith.addf %52, %53 : vector<8x32xf32>
    %cst_38 = arith.constant dense<0.000000e+00> : vector<8x128xf32>
    %55 = tpu.matmul %54, %15, %cst_38 {dimension_numbers = #tpu.dot_dimension_numbers<[1], [0], [0], [1], [0, 0, 1, 1], [], []>} : vector<8x32xf32>, vector<32x128xf32>, vector<8x128xf32> -> vector<8x128xf32>
    %56 = vector.extract_strided_slice %55 {offsets = [0, 0], sizes = [8, 64], strides = [1, 1]} : vector<8x128xf32> to vector<8x64xf32>
    %57 = vector.extract_strided_slice %55 {offsets = [0, 64], sizes = [8, 64], strides = [1, 1]} : vector<8x128xf32> to vector<8x64xf32>
    %cst_39 = arith.constant dense<0.000000e+00> : vector<32x64xf32>
    %58 = tpu.matmul %31, %56, %cst_39 {dimension_numbers = #tpu.dot_dimension_numbers<[1], [0], [0], [1], [0, 0, 1, 1], [], []>} : vector<32x8xf32>, vector<8x64xf32>, vector<32x64xf32> -> vector<32x64xf32>
    %59 = vector.extract_strided_slice %58 {offsets = [0, 0], sizes = [8, 64], strides = [1, 1]} : vector<32x64xf32> to vector<8x64xf32>
    %60 = vector.extract_strided_slice %27 {offsets = [0, 0], sizes = [1, 64], strides = [1, 1]} : vector<4x64xf32> to vector<1x64xf32>
    %61 = vector.broadcast %60 : vector<1x64xf32> to vector<8x64xf32>
    %62 = arith.mulf %59, %61 : vector<8x64xf32>
    %63 = vector.broadcast %9 : vector<1x64xf32> to vector<8x64xf32>
    %64 = arith.addf %63, %62 : vector<8x64xf32>
    %65 = vector.extract_strided_slice %58 {offsets = [8, 0], sizes = [8, 64], strides = [1, 1]} : vector<32x64xf32> to vector<8x64xf32>
    %66 = vector.extract_strided_slice %27 {offsets = [1, 0], sizes = [1, 64], strides = [1, 1]} : vector<4x64xf32> to vector<1x64xf32>
    %67 = vector.broadcast %66 : vector<1x64xf32> to vector<8x64xf32>
    %68 = arith.mulf %65, %67 : vector<8x64xf32>
    %69 = arith.addf %64, %68 : vector<8x64xf32>
    %70 = vector.extract_strided_slice %58 {offsets = [16, 0], sizes = [8, 64], strides = [1, 1]} : vector<32x64xf32> to vector<8x64xf32>
    %71 = vector.extract_strided_slice %27 {offsets = [2, 0], sizes = [1, 64], strides = [1, 1]} : vector<4x64xf32> to vector<1x64xf32>
    %72 = vector.broadcast %71 : vector<1x64xf32> to vector<8x64xf32>
    %73 = arith.mulf %70, %72 : vector<8x64xf32>
    %74 = arith.addf %69, %73 : vector<8x64xf32>
    %75 = vector.extract_strided_slice %58 {offsets = [24, 0], sizes = [8, 64], strides = [1, 1]} : vector<32x64xf32> to vector<8x64xf32>
    %76 = vector.extract_strided_slice %27 {offsets = [3, 0], sizes = [1, 64], strides = [1, 1]} : vector<4x64xf32> to vector<1x64xf32>
    %77 = vector.broadcast %76 : vector<1x64xf32> to vector<8x64xf32>
    %78 = arith.mulf %75, %77 : vector<8x64xf32>
    %79 = arith.addf %74, %78 : vector<8x64xf32>
    %cst_40 = arith.constant 0.000000e+00 : f32
    %80 = vector.broadcast %cst_40 : f32 to vector<8x64xf32>
    %81 = arith.subf %80, %79 : vector<8x64xf32>
    %82 = math.exp %81 : vector<8x64xf32>
    %cst_41 = arith.constant 1.000000e+00 : f32
    %83 = vector.broadcast %cst_41 : f32 to vector<8x64xf32>
    %84 = arith.addf %83, %82 : vector<8x64xf32>
    %cst_42 = arith.constant 1.000000e+00 : f32
    %85 = vector.broadcast %cst_42 : f32 to vector<8x64xf32>
    %86 = arith.divf %85, %84 : vector<8x64xf32>
    %87 = arith.mulf %79, %86 : vector<8x64xf32>
    %cst_43 = arith.constant dense<0.000000e+00> : vector<8x34xf32>
    %88 = tpu.matmul %87, %23, %cst_43 {dimension_numbers = #tpu.dot_dimension_numbers<[1], [0], [0], [1], [0, 0, 1, 1], [], []>} : vector<8x64xf32>, vector<64x34xf32>, vector<8x34xf32> -> vector<8x34xf32>
    %89 = vector.extract_strided_slice %88 {offsets = [0, 0], sizes = [8, 2], strides = [1, 1]} : vector<8x34xf32> to vector<8x2xf32>
    %90 = vector.extract_strided_slice %88 {offsets = [0, 2], sizes = [8, 16], strides = [1, 1]} : vector<8x34xf32> to vector<8x16xf32>
    %91 = vector.extract_strided_slice %88 {offsets = [0, 18], sizes = [8, 16], strides = [1, 1]} : vector<8x34xf32> to vector<8x16xf32>
    %cst_44 = arith.constant dense<0.000000e+00> : vector<8x64xf32>
    %92 = tpu.matmul %89, %29, %cst_44 {dimension_numbers = #tpu.dot_dimension_numbers<[1], [0], [0], [1], [0, 0, 1, 1], [], []>} : vector<8x2xf32>, vector<2x64xf32>, vector<8x64xf32> -> vector<8x64xf32>
    %93 = vector.broadcast %10 : vector<1x64xf32> to vector<8x64xf32>
    %94 = arith.addf %92, %93 : vector<8x64xf32>
    %cst_45 = arith.constant 0.000000e+00 : f32
    %95 = vector.broadcast %cst_45 : f32 to vector<8x64xf32>
    %96 = arith.maximumf %94, %95 : vector<8x64xf32>
    %97 = math.absf %94 : vector<8x64xf32>
    %cst_46 = arith.constant 0.000000e+00 : f32
    %98 = vector.broadcast %cst_46 : f32 to vector<8x64xf32>
    %99 = arith.subf %98, %97 : vector<8x64xf32>
    %100 = math.exp %99 : vector<8x64xf32>
    %cst_47 = arith.constant 1.000000e+00 : f32
    %101 = vector.broadcast %cst_47 : f32 to vector<8x64xf32>
    %102 = arith.addf %101, %100 : vector<8x64xf32>
    %103 = math.log %102 : vector<8x64xf32>
    %104 = arith.addf %96, %103 : vector<8x64xf32>
    %105 = tpu.transpose %90, [1, 0] : vector<8x16xf32> -> vector<16x8xf32>
    %106 = tpu.transpose %91, [1, 0] : vector<8x16xf32> -> vector<16x8xf32>
    %107 = arith.mulf %104, %87 : vector<8x64xf32>
    %cst_48 = arith.constant 0.000000e+00 : f32
    %108 = vector.broadcast %cst_48 : f32 to vector<16x64xf32>
    %109 = vector.extract_strided_slice %104 {offsets = [0, 0], sizes = [1, 64], strides = [1, 1]} : vector<8x64xf32> to vector<1x64xf32>
    %110 = vector.broadcast %109 : vector<1x64xf32> to vector<16x64xf32>
    %111 = arith.mulf %110, %25 : vector<16x64xf32>
    %112 = math.exp %111 : vector<16x64xf32>
    %113 = arith.mulf %112, %108 : vector<16x64xf32>
    %114 = vector.extract_strided_slice %105 {offsets = [0, 0], sizes = [16, 1], strides = [1, 1]} : vector<16x8xf32> to vector<16x1xf32>
    %115 = vector.extract_strided_slice %107 {offsets = [0, 0], sizes = [1, 64], strides = [1, 1]} : vector<8x64xf32> to vector<1x64xf32>
    %116 = vector.broadcast %114 : vector<16x1xf32> to vector<16x64xf32>
    %117 = vector.broadcast %115 : vector<1x64xf32> to vector<16x64xf32>
    %118 = arith.mulf %116, %117 : vector<16x64xf32>
    %119 = arith.addf %113, %118 : vector<16x64xf32>
    %120 = vector.extract_strided_slice %106 {offsets = [0, 0], sizes = [16, 1], strides = [1, 1]} : vector<16x8xf32> to vector<16x1xf32>
    %121 = vector.broadcast %120 : vector<16x1xf32> to vector<16x64xf32>
    %122 = arith.mulf %121, %119 : vector<16x64xf32>
    %cst_49 = arith.constant dense<0.000000e+00> : vector<64xf32>
    %123 = vector.multi_reduction <add>, %122, %cst_49 [0] : vector<16x64xf32> to vector<64xf32>
    %124 = vector.shape_cast %123 : vector<64xf32> to vector<1x64xf32>
    %c0_50 = arith.constant 0 : index
    %c0_51 = arith.constant 0 : index
    %125 = vector.load %arg7[%c0_50, %c0_51] : memref<8x64xf32, #tpu.memory_space<vmem>>, vector<1x64xf32>
    tpu.vector_store %arg7[%c0_50, %c0_51], %124 {strides = array<i32>} : memref<8x64xf32, #tpu.memory_space<vmem>>, vector<1x64xf32>,
    %126 = vector.extract_strided_slice %104 {offsets = [1, 0], sizes = [1, 64], strides = [1, 1]} : vector<8x64xf32> to vector<1x64xf32>
    %127 = vector.broadcast %126 : vector<1x64xf32> to vector<16x64xf32>
    %128 = arith.mulf %127, %25 : vector<16x64xf32>
    %129 = math.exp %128 : vector<16x64xf32>
    %130 = arith.mulf %129, %119 : vector<16x64xf32>
    %131 = vector.extract_strided_slice %105 {offsets = [0, 1], sizes = [16, 1], strides = [1, 1]} : vector<16x8xf32> to vector<16x1xf32>
    %132 = vector.extract_strided_slice %107 {offsets = [1, 0], sizes = [1, 64], strides = [1, 1]} : vector<8x64xf32> to vector<1x64xf32>
    %133 = vector.broadcast %131 : vector<16x1xf32> to vector<16x64xf32>
    %134 = vector.broadcast %132 : vector<1x64xf32> to vector<16x64xf32>
    %135 = arith.mulf %133, %134 : vector<16x64xf32>
    %136 = arith.addf %130, %135 : vector<16x64xf32>
    %137 = vector.extract_strided_slice %106 {offsets = [0, 1], sizes = [16, 1], strides = [1, 1]} : vector<16x8xf32> to vector<16x1xf32>
    %138 = vector.broadcast %137 : vector<16x1xf32> to vector<16x64xf32>
    %139 = arith.mulf %138, %136 : vector<16x64xf32>
    %cst_52 = arith.constant dense<0.000000e+00> : vector<64xf32>
    %140 = vector.multi_reduction <add>, %139, %cst_52 [0] : vector<16x64xf32> to vector<64xf32>
    %141 = vector.shape_cast %140 : vector<64xf32> to vector<1x64xf32>
    %c1 = arith.constant 1 : index
    %c0_53 = arith.constant 0 : index
    %142 = vector.load %arg7[%c1, %c0_53] : memref<8x64xf32, #tpu.memory_space<vmem>>, vector<1x64xf32>
    tpu.vector_store %arg7[%c1, %c0_53], %141 {strides = array<i32>} : memref<8x64xf32, #tpu.memory_space<vmem>>, vector<1x64xf32>,
    %143 = vector.extract_strided_slice %104 {offsets = [2, 0], sizes = [1, 64], strides = [1, 1]} : vector<8x64xf32> to vector<1x64xf32>
    %144 = vector.broadcast %143 : vector<1x64xf32> to vector<16x64xf32>
    %145 = arith.mulf %144, %25 : vector<16x64xf32>
    %146 = math.exp %145 : vector<16x64xf32>
    %147 = arith.mulf %146, %136 : vector<16x64xf32>
    %148 = vector.extract_strided_slice %105 {offsets = [0, 2], sizes = [16, 1], strides = [1, 1]} : vector<16x8xf32> to vector<16x1xf32>
    %149 = vector.extract_strided_slice %107 {offsets = [2, 0], sizes = [1, 64], strides = [1, 1]} : vector<8x64xf32> to vector<1x64xf32>
    %150 = vector.broadcast %148 : vector<16x1xf32> to vector<16x64xf32>
    %151 = vector.broadcast %149 : vector<1x64xf32> to vector<16x64xf32>
    %152 = arith.mulf %150, %151 : vector<16x64xf32>
    %153 = arith.addf %147, %152 : vector<16x64xf32>
    %154 = vector.extract_strided_slice %106 {offsets = [0, 2], sizes = [16, 1], strides = [1, 1]} : vector<16x8xf32> to vector<16x1xf32>
    %155 = vector.broadcast %154 : vector<16x1xf32> to vector<16x64xf32>
    %156 = arith.mulf %155, %153 : vector<16x64xf32>
    %cst_54 = arith.constant dense<0.000000e+00> : vector<64xf32>
    %157 = vector.multi_reduction <add>, %156, %cst_54 [0] : vector<16x64xf32> to vector<64xf32>
    %158 = vector.shape_cast %157 : vector<64xf32> to vector<1x64xf32>
    %c2 = arith.constant 2 : index
    %c0_55 = arith.constant 0 : index
    %159 = vector.load %arg7[%c2, %c0_55] : memref<8x64xf32, #tpu.memory_space<vmem>>, vector<1x64xf32>
    tpu.vector_store %arg7[%c2, %c0_55], %158 {strides = array<i32>} : memref<8x64xf32, #tpu.memory_space<vmem>>, vector<1x64xf32>,
    %160 = vector.extract_strided_slice %104 {offsets = [3, 0], sizes = [1, 64], strides = [1, 1]} : vector<8x64xf32> to vector<1x64xf32>
    %161 = vector.broadcast %160 : vector<1x64xf32> to vector<16x64xf32>
    %162 = arith.mulf %161, %25 : vector<16x64xf32>
    %163 = math.exp %162 : vector<16x64xf32>
    %164 = arith.mulf %163, %153 : vector<16x64xf32>
    %165 = vector.extract_strided_slice %105 {offsets = [0, 3], sizes = [16, 1], strides = [1, 1]} : vector<16x8xf32> to vector<16x1xf32>
    %166 = vector.extract_strided_slice %107 {offsets = [3, 0], sizes = [1, 64], strides = [1, 1]} : vector<8x64xf32> to vector<1x64xf32>
    %167 = vector.broadcast %165 : vector<16x1xf32> to vector<16x64xf32>
    %168 = vector.broadcast %166 : vector<1x64xf32> to vector<16x64xf32>
    %169 = arith.mulf %167, %168 : vector<16x64xf32>
    %170 = arith.addf %164, %169 : vector<16x64xf32>
    %171 = vector.extract_strided_slice %106 {offsets = [0, 3], sizes = [16, 1], strides = [1, 1]} : vector<16x8xf32> to vector<16x1xf32>
    %172 = vector.broadcast %171 : vector<16x1xf32> to vector<16x64xf32>
    %173 = arith.mulf %172, %170 : vector<16x64xf32>
    %cst_56 = arith.constant dense<0.000000e+00> : vector<64xf32>
    %174 = vector.multi_reduction <add>, %173, %cst_56 [0] : vector<16x64xf32> to vector<64xf32>
    %175 = vector.shape_cast %174 : vector<64xf32> to vector<1x64xf32>
    %c3 = arith.constant 3 : index
    %c0_57 = arith.constant 0 : index
    %176 = vector.load %arg7[%c3, %c0_57] : memref<8x64xf32, #tpu.memory_space<vmem>>, vector<1x64xf32>
    tpu.vector_store %arg7[%c3, %c0_57], %175 {strides = array<i32>} : memref<8x64xf32, #tpu.memory_space<vmem>>, vector<1x64xf32>,
    %177 = vector.extract_strided_slice %104 {offsets = [4, 0], sizes = [1, 64], strides = [1, 1]} : vector<8x64xf32> to vector<1x64xf32>
    %178 = vector.broadcast %177 : vector<1x64xf32> to vector<16x64xf32>
    %179 = arith.mulf %178, %25 : vector<16x64xf32>
    %180 = math.exp %179 : vector<16x64xf32>
    %181 = arith.mulf %180, %170 : vector<16x64xf32>
    %182 = vector.extract_strided_slice %105 {offsets = [0, 4], sizes = [16, 1], strides = [1, 1]} : vector<16x8xf32> to vector<16x1xf32>
    %183 = vector.extract_strided_slice %107 {offsets = [4, 0], sizes = [1, 64], strides = [1, 1]} : vector<8x64xf32> to vector<1x64xf32>
    %184 = vector.broadcast %182 : vector<16x1xf32> to vector<16x64xf32>
    %185 = vector.broadcast %183 : vector<1x64xf32> to vector<16x64xf32>
    %186 = arith.mulf %184, %185 : vector<16x64xf32>
    %187 = arith.addf %181, %186 : vector<16x64xf32>
    %188 = vector.extract_strided_slice %106 {offsets = [0, 4], sizes = [16, 1], strides = [1, 1]} : vector<16x8xf32> to vector<16x1xf32>
    %189 = vector.broadcast %188 : vector<16x1xf32> to vector<16x64xf32>
    %190 = arith.mulf %189, %187 : vector<16x64xf32>
    %cst_58 = arith.constant dense<0.000000e+00> : vector<64xf32>
    %191 = vector.multi_reduction <add>, %190, %cst_58 [0] : vector<16x64xf32> to vector<64xf32>
    %192 = vector.shape_cast %191 : vector<64xf32> to vector<1x64xf32>
    %c4 = arith.constant 4 : index
    %c0_59 = arith.constant 0 : index
    %193 = vector.load %arg7[%c4, %c0_59] : memref<8x64xf32, #tpu.memory_space<vmem>>, vector<1x64xf32>
    tpu.vector_store %arg7[%c4, %c0_59], %192 {strides = array<i32>} : memref<8x64xf32, #tpu.memory_space<vmem>>, vector<1x64xf32>,
    %194 = vector.extract_strided_slice %104 {offsets = [5, 0], sizes = [1, 64], strides = [1, 1]} : vector<8x64xf32> to vector<1x64xf32>
    %195 = vector.broadcast %194 : vector<1x64xf32> to vector<16x64xf32>
    %196 = arith.mulf %195, %25 : vector<16x64xf32>
    %197 = math.exp %196 : vector<16x64xf32>
    %198 = arith.mulf %197, %187 : vector<16x64xf32>
    %199 = vector.extract_strided_slice %105 {offsets = [0, 5], sizes = [16, 1], strides = [1, 1]} : vector<16x8xf32> to vector<16x1xf32>
    %200 = vector.extract_strided_slice %107 {offsets = [5, 0], sizes = [1, 64], strides = [1, 1]} : vector<8x64xf32> to vector<1x64xf32>
    %201 = vector.broadcast %199 : vector<16x1xf32> to vector<16x64xf32>
    %202 = vector.broadcast %200 : vector<1x64xf32> to vector<16x64xf32>
    %203 = arith.mulf %201, %202 : vector<16x64xf32>
    %204 = arith.addf %198, %203 : vector<16x64xf32>
    %205 = vector.extract_strided_slice %106 {offsets = [0, 5], sizes = [16, 1], strides = [1, 1]} : vector<16x8xf32> to vector<16x1xf32>
    %206 = vector.broadcast %205 : vector<16x1xf32> to vector<16x64xf32>
    %207 = arith.mulf %206, %204 : vector<16x64xf32>
    %cst_60 = arith.constant dense<0.000000e+00> : vector<64xf32>
    %208 = vector.multi_reduction <add>, %207, %cst_60 [0] : vector<16x64xf32> to vector<64xf32>
    %209 = vector.shape_cast %208 : vector<64xf32> to vector<1x64xf32>
    %c5 = arith.constant 5 : index
    %c0_61 = arith.constant 0 : index
    %210 = vector.load %arg7[%c5, %c0_61] : memref<8x64xf32, #tpu.memory_space<vmem>>, vector<1x64xf32>
    tpu.vector_store %arg7[%c5, %c0_61], %209 {strides = array<i32>} : memref<8x64xf32, #tpu.memory_space<vmem>>, vector<1x64xf32>,
    %211 = vector.extract_strided_slice %104 {offsets = [6, 0], sizes = [1, 64], strides = [1, 1]} : vector<8x64xf32> to vector<1x64xf32>
    %212 = vector.broadcast %211 : vector<1x64xf32> to vector<16x64xf32>
    %213 = arith.mulf %212, %25 : vector<16x64xf32>
    %214 = math.exp %213 : vector<16x64xf32>
    %215 = arith.mulf %214, %204 : vector<16x64xf32>
    %216 = vector.extract_strided_slice %105 {offsets = [0, 6], sizes = [16, 1], strides = [1, 1]} : vector<16x8xf32> to vector<16x1xf32>
    %217 = vector.extract_strided_slice %107 {offsets = [6, 0], sizes = [1, 64], strides = [1, 1]} : vector<8x64xf32> to vector<1x64xf32>
    %218 = vector.broadcast %216 : vector<16x1xf32> to vector<16x64xf32>
    %219 = vector.broadcast %217 : vector<1x64xf32> to vector<16x64xf32>
    %220 = arith.mulf %218, %219 : vector<16x64xf32>
    %221 = arith.addf %215, %220 : vector<16x64xf32>
    %222 = vector.extract_strided_slice %106 {offsets = [0, 6], sizes = [16, 1], strides = [1, 1]} : vector<16x8xf32> to vector<16x1xf32>
    %223 = vector.broadcast %222 : vector<16x1xf32> to vector<16x64xf32>
    %224 = arith.mulf %223, %221 : vector<16x64xf32>
    %cst_62 = arith.constant dense<0.000000e+00> : vector<64xf32>
    %225 = vector.multi_reduction <add>, %224, %cst_62 [0] : vector<16x64xf32> to vector<64xf32>
    %226 = vector.shape_cast %225 : vector<64xf32> to vector<1x64xf32>
    %c6 = arith.constant 6 : index
    %c0_63 = arith.constant 0 : index
    %227 = vector.load %arg7[%c6, %c0_63] : memref<8x64xf32, #tpu.memory_space<vmem>>, vector<1x64xf32>
    tpu.vector_store %arg7[%c6, %c0_63], %226 {strides = array<i32>} : memref<8x64xf32, #tpu.memory_space<vmem>>, vector<1x64xf32>,
    %228 = vector.extract_strided_slice %104 {offsets = [7, 0], sizes = [1, 64], strides = [1, 1]} : vector<8x64xf32> to vector<1x64xf32>
    %229 = vector.broadcast %228 : vector<1x64xf32> to vector<16x64xf32>
    %230 = arith.mulf %229, %25 : vector<16x64xf32>
    %231 = math.exp %230 : vector<16x64xf32>
    %232 = arith.mulf %231, %221 : vector<16x64xf32>
    %233 = vector.extract_strided_slice %105 {offsets = [0, 7], sizes = [16, 1], strides = [1, 1]} : vector<16x8xf32> to vector<16x1xf32>
    %234 = vector.extract_strided_slice %107 {offsets = [7, 0], sizes = [1, 64], strides = [1, 1]} : vector<8x64xf32> to vector<1x64xf32>
    %235 = vector.broadcast %233 : vector<16x1xf32> to vector<16x64xf32>
    %236 = vector.broadcast %234 : vector<1x64xf32> to vector<16x64xf32>
    %237 = arith.mulf %235, %236 : vector<16x64xf32>
    %238 = arith.addf %232, %237 : vector<16x64xf32>
    %239 = vector.extract_strided_slice %106 {offsets = [0, 7], sizes = [16, 1], strides = [1, 1]} : vector<16x8xf32> to vector<16x1xf32>
    %240 = vector.broadcast %239 : vector<16x1xf32> to vector<16x64xf32>
    %241 = arith.mulf %240, %238 : vector<16x64xf32>
    %cst_64 = arith.constant dense<0.000000e+00> : vector<64xf32>
    %242 = vector.multi_reduction <add>, %241, %cst_64 [0] : vector<16x64xf32> to vector<64xf32>
    %243 = vector.shape_cast %242 : vector<64xf32> to vector<1x64xf32>
    %c7 = arith.constant 7 : index
    %c0_65 = arith.constant 0 : index
    %244 = vector.load %arg7[%c7, %c0_65] : memref<8x64xf32, #tpu.memory_space<vmem>>, vector<1x64xf32>
    tpu.vector_store %arg7[%c7, %c0_65], %243 {strides = array<i32>} : memref<8x64xf32, #tpu.memory_space<vmem>>, vector<1x64xf32>,
    %c0_66 = arith.constant 0 : index
    %c0_67 = arith.constant 0 : index
    %245 = vector.load %arg7[%c0_66, %c0_67] : memref<8x64xf32, #tpu.memory_space<vmem>>, vector<8x64xf32>
    %246 = vector.broadcast %11 : vector<1x64xf32> to vector<8x64xf32>
    %247 = arith.mulf %87, %246 : vector<8x64xf32>
    %248 = arith.addf %245, %247 : vector<8x64xf32>
    %cst_68 = arith.constant 0.000000e+00 : f32
    %249 = vector.broadcast %cst_68 : f32 to vector<8x64xf32>
    %250 = arith.subf %249, %57 : vector<8x64xf32>
    %251 = math.exp %250 : vector<8x64xf32>
    %cst_69 = arith.constant 1.000000e+00 : f32
    %252 = vector.broadcast %cst_69 : f32 to vector<8x64xf32>
    %253 = arith.addf %252, %251 : vector<8x64xf32>
    %cst_70 = arith.constant 1.000000e+00 : f32
    %254 = vector.broadcast %cst_70 : f32 to vector<8x64xf32>
    %255 = arith.divf %254, %253 : vector<8x64xf32>
    %256 = arith.mulf %57, %255 : vector<8x64xf32>
    %257 = arith.mulf %248, %256 : vector<8x64xf32>
    %cst_71 = arith.constant dense<0.000000e+00> : vector<8x32xf32>
    %258 = tpu.matmul %257, %21, %cst_71 {dimension_numbers = #tpu.dot_dimension_numbers<[1], [0], [0], [1], [0, 0, 1, 1], [], []>} : vector<8x64xf32>, vector<64x32xf32>, vector<8x32xf32> -> vector<8x32xf32>
    %259 = arith.addf %258, %32 : vector<8x32xf32>
    %cst_72 = arith.constant dense<0.000000e+00> : vector<8xf32>
    %260 = vector.multi_reduction <add>, %259, %cst_72 [1] : vector<8x32xf32> to vector<8xf32>
    %261 = vector.shape_cast %260 : vector<8xf32> to vector<8x1xf32>
    %cst_73 = arith.constant 3.200000e+01 : f32
    %262 = vector.broadcast %cst_73 : f32 to vector<8x1xf32>
    %263 = arith.divf %261, %262 : vector<8x1xf32>
    %264 = vector.broadcast %263 : vector<8x1xf32> to vector<8x32xf32>
    %265 = arith.subf %259, %264 : vector<8x32xf32>
    %266 = arith.mulf %265, %265 : vector<8x32xf32>
    %cst_74 = arith.constant dense<0.000000e+00> : vector<8xf32>
    %267 = vector.multi_reduction <add>, %266, %cst_74 [1] : vector<8x32xf32> to vector<8xf32>
    %268 = vector.shape_cast %267 : vector<8xf32> to vector<8x1xf32>
    %cst_75 = arith.constant 3.200000e+01 : f32
    %269 = vector.broadcast %cst_75 : f32 to vector<8x1xf32>
    %270 = arith.divf %268, %269 : vector<8x1xf32>
    %271 = vector.broadcast %263 : vector<8x1xf32> to vector<8x32xf32>
    %272 = arith.subf %259, %271 : vector<8x32xf32>
    %cst_76 = arith.constant 9.99999974E-6 : f32
    %273 = vector.broadcast %cst_76 : f32 to vector<8x1xf32>
    %274 = arith.addf %270, %273 : vector<8x1xf32>
    %275 = math.rsqrt %274 : vector<8x1xf32>
    %276 = vector.broadcast %275 : vector<8x1xf32> to vector<8x32xf32>
    %277 = arith.mulf %272, %276 : vector<8x32xf32>
    %278 = vector.broadcast %7 : vector<1x32xf32> to vector<8x32xf32>
    %279 = arith.mulf %277, %278 : vector<8x32xf32>
    %280 = vector.broadcast %8 : vector<1x32xf32> to vector<8x32xf32>
    %281 = arith.addf %279, %280 : vector<8x32xf32>
    %cst_77 = arith.constant dense<0.000000e+00> : vector<8x128xf32>
    %282 = tpu.matmul %281, %17, %cst_77 {dimension_numbers = #tpu.dot_dimension_numbers<[1], [0], [0], [1], [0, 0, 1, 1], [], []>} : vector<8x32xf32>, vector<32x128xf32>, vector<8x128xf32> -> vector<8x128xf32>
    %283 = vector.broadcast %13 : vector<1x128xf32> to vector<8x128xf32>
    %284 = arith.addf %282, %283 : vector<8x128xf32>
    %cst_78 = arith.constant 0.000000e+00 : f32
    %285 = vector.broadcast %cst_78 : f32 to vector<8x128xf32>
    %286 = arith.maximumf %284, %285 : vector<8x128xf32>
    %cst_79 = arith.constant dense<0.000000e+00> : vector<8x32xf32>
    %287 = tpu.matmul %286, %19, %cst_79 {dimension_numbers = #tpu.dot_dimension_numbers<[1], [0], [0], [1], [0, 0, 1, 1], [], []>} : vector<8x128xf32>, vector<128x32xf32>, vector<8x32xf32> -> vector<8x32xf32>
    %288 = arith.addf %281, %287 : vector<8x32xf32>
    %289 = vector.broadcast %12 : vector<1x32xf32> to vector<8x32xf32>
    %290 = arith.addf %288, %289 : vector<8x32xf32>
    %291 = arith.addf %259, %290 : vector<8x32xf32>
    %c0_80 = arith.constant 0 : index
    %c0_81 = arith.constant 0 : index
    %292 = vector.load %arg6[%c0_80, %c0_81] : memref<8x32xf32, #tpu.memory_space<vmem>>, vector<8x32xf32>
    tpu.vector_store %arg6[%c0_80, %c0_81], %291 {strides = array<i32>} : memref<8x32xf32, #tpu.memory_space<vmem>>, vector<8x32xf32>,
    %cst_82 = arith.constant dense<0.000000e+00> : vector<32xf32>
    %293 = vector.multi_reduction <add>, %291, %cst_82 [0] : vector<8x32xf32> to vector<32xf32>
    %294 = vector.shape_cast %293 : vector<32xf32> to vector<1x32xf32>
    %cst_83 = arith.constant 8.000000e+00 : f32
    %295 = vector.broadcast %cst_83 : f32 to vector<1x32xf32>
    %296 = arith.divf %294, %295 : vector<1x32xf32>
    %c0_84 = arith.constant 0 : index
    %c0_85 = arith.constant 0 : index
    %c0_86 = arith.constant 0 : index
    %297 = vector.load %arg5[%c0_84, %c0_85, %c0_86] : memref<1x1x32xf32, #tpu.memory_space<vmem>>, vector<1x1x32xf32>
    %298 = vector.shape_cast %297 : vector<1x1x32xf32> to vector<1x32xf32>
    %299 = vector.shape_cast %296 : vector<1x32xf32> to vector<1x1x32xf32>
    tpu.vector_store %arg5[%c0_84, %c0_85, %c0_86], %299 {strides = array<i32>} : memref<1x1x32xf32, #tpu.memory_space<vmem>>, vector<1x1x32xf32>,
    return
  }
  func.func @transform_0(%arg0: i32, %arg1: i32) -> (i32, i32, i32) {
    %c0_i32 = arith.constant 0 : i32
    %c0_i32_0 = arith.constant 0 : i32
    %c0_i32_1 = arith.constant 0 : i32
    return %arg0, %c0_i32, %c0_i32_0 : i32, i32, i32
  }
  func.func @transform_1(%arg0: i32, %arg1: i32) -> (i32, i32, i32, i32) {
    %c0_i32 = arith.constant 0 : i32
    %c0_i32_0 = arith.constant 0 : i32
    %c0_i32_1 = arith.constant 0 : i32
    return %arg0, %arg1, %c0_i32, %c0_i32_0 : i32, i32, i32, i32
  }
  func.func @transform_2(%arg0: i32, %arg1: i32) -> (i32, i32, i32, i32) {
    %c0_i32 = arith.constant 0 : i32
    %c0_i32_0 = arith.constant 0 : i32
    %c0_i32_1 = arith.constant 0 : i32
    return %arg0, %arg1, %c0_i32, %c0_i32_0 : i32, i32, i32, i32
  }
  func.func @transform_3(%arg0: i32, %arg1: i32) -> (i32, i32, i32) {
    %c0_i32 = arith.constant 0 : i32
    %c0_i32_0 = arith.constant 0 : i32
    %c0_i32_1 = arith.constant 0 : i32
    return %arg0, %c0_i32, %c0_i32_0 : i32, i32, i32
  }
}

</mosaic_0001>

<bundles_post_ra>
// kernel: mamba_model_forward.3
= control target key start
LH: loop header
LB: loop body
LE: loop exit
PB: predicated region body
PF: predicated region fallthrough
CT: control target
= control target key end

     0   :  { %s317_s0 = inlined_call_operand.vmem [shape: f32[2,1,32], index: 0, kind: input, shape index: {}]   ;;  %s318_s1 = inlined_call_operand.vmem [shape: f32[1,16], index: 1, kind: input, shape index: {}]   ;;  %s319_s2 = inlined_call_operand.vmem [shape: f32[80,40], index: 2, kind: input, shape index: {}]   ;;  %s320_s3 = inlined_call_operand.vmem [shape: f32[1,40], index: 3, kind: input, shape index: {}]   ;;  %s321_s4 = inlined_call_operand.vmem [shape: f32[40,1], index: 4, kind: input, shape index: {}]   ;;  %s322_s5 = inlined_call_operand.<no memory space> [shape: f32[1,1], index: 5, kind: input, shape index: {}]   ;;  %s323_s6 = inlined_call_operand.hbm [shape: f32[1,1], index: 6, kind: output, shape index: {}]  }
   0x1   :  { %v11_v0 = vstv %s322_s5 }
   0x2   :  { %12 = vst [vmem:[#allocation2] sm:$0x1] %v11_v0 }
   0x3   :  { %v37_v1 = vld [vmem:[%s319_s2 + $0x38] sm:$0xff]  ;;  %v86_v3 = vld [vmem:[%s319_s2 + $0x48] sm:$0xff]  ;;  %v36_v4 = vld [vmem:[%s319_s2 + $0x30] sm:$0xff]  ;;  %vm87_vm0 = vcmask 130048  }
   0x4   :  { %v33_v2 = vld [vmem:[%s319_s2 + $0x18] sm:$0xff]  ;;  %54 = vmatpush.msra.mxu0 %v37_v1  ;;  %v32_v5 = vld [vmem:[%s319_s2 + $0x10] sm:$0xff]  ;;  %v85_v6 = vld [vmem:[%s319_s2 + $0x40] sm:$0xff]  ;;  %105 = vmatpush.msra.mxu2 %v86_v3 }
   0x5   :  { %77 = vmatpush.msra.mxu1 %v33_v2  ;;  %v29_v7 = vld [vmem:[%s318_s1] sm:$0x1]  ;;  %v35_v8 = vld [vmem:[%s319_s2 + $0x28] sm:$0xff] }
   0x6   :  { %55 = vmatpush.msra.mxu0 %v36_v4  ;;  %v31_v9 = vld [vmem:[%s319_s2 + $0x8] sm:$0xff]  ;;  %106 = vmatpush.msra.mxu2 %v85_v6  ;;  %v34_v10 = vld [vmem:[%s319_s2 + $0x20] sm:$0xff] }
   0x7   :  { %78 = vmatpush.msra.mxu1 %v32_v5 }
   0x8   :  { %13 = vsyncpa [#allocation4], 0  ;;  %185 = vmatmul.msk.f32.vlgmr.msra.gmra.mxu2 %vm87_vm0, %v29_v7  ;;  %56 = vmatpush.msra.mxu0 %v35_v8  ;;  %v30_v11 = vld [vmem:[%s319_s2] sm:$0xff]  ;;  %vm38_vm1 = vcmask 261120   ;;  %v118_v15 = vld [vmem:[%s321_s4 + $0x18] sm:$0xff]  ;;  %vm121_vm2 = vcmask 326656  }
   0x9   :  { %v182_v12 = vld [vmem:[%s317_s0 + $0x1] sm:$0x1]  ;;  %79 = vmatpush.msra.mxu1 %v31_v9  ;;  %v26_v13 = vld [vmem:[%s317_s0] sm:$0x1]  ;;  %v117_v16 = vld [vmem:[%s321_s4 + $0x10] sm:$0xff]  ;;  %s173_s10 = sshll.u32 %s323_s6, 4  ;;  %s174_s10 = int_to_ptr.hbm [resolvable:$true] %s173_s10 }
   0xa   :  { %57 = vmatpush.msra.mxu0 %v34_v10  ;;  %v119_v14 = vld [vmem:[%s321_s4 + $0x20] sm:$0xff]  ;;  %v116_v17 = vld [vmem:[%s321_s4 + $0x8] sm:$0xff]  ;;  %vm164_vm6 = vcmask 0  }
   0xb   :  { %80 = vmatpush.msra.mxu1 %v30_v11  ;;  %183 = vmatmul.msk.f32.vlgmr.msra.gmra.mxu0 %vm38_vm1, %v182_v12  ;;  %v115_v18 = vld [vmem:[%s321_s4] sm:$0xff] }
   0xc   :  { %184 = vmatmul.msk.f32.vlgmr.msra.gmra.mxu1 %vm38_vm1, %v26_v13  ;;  %136 = vmatpush.msra.mxu3 %v119_v14  ;;  %v112_v23 = vld [vmem:[%s320_s3] sm:$0x1]  ;;  %s218_s3 = smov [#allocation3]  }
   0xd   :  { %v120_v27 = vld [vmem:[#allocation2] sm:$0x1]  ;;  %s171_s4 = sshll.u32 %s218_s3, 4  ;;  %s172_s4 = int_to_ptr.vmem [resolvable:$true] %s171_s4 }
   0xe   :  { %137 = vmatpush.msra.mxu3 %v118_v15 }
  0x10   :  { %138 = vmatpush.msra.mxu3 %v117_v16 }
  0x12   :  { %139 = vmatpush.msra.mxu3 %v116_v17 }
  0x14   :  { %140 = vmatpush.msra.mxu3 %v115_v18 }
  0x88   :  { %v59_v19 = vpop.f32.mrf.mxu0 }
  0x89   :  { %v82_v20 = vpop.f32.mrf.mxu1 }
  0x8a   :  { %v83_v21 = vadd.f32 %v82_v20, %v59_v19 }
  0x8b   :  { %v108_v22 = vpop.f32.mrf.mxu2 }
  0x8c   :  { %v111_v24 = vadd.f32 %v108_v22, %v83_v21 }
  0x8e   :  { %v113_v25 = vadd.f32 %v112_v23, %v111_v24 }
  0x90   :  { %v114_v26 = vmax.f32 %v113_v25, 0.0 }
  0x92   :  { %186 = vmatmul.msk.f32.vlgmr.msra.gmra.mxu3 %vm121_vm2, %v114_v26 }
 0x115   :  { %v142_v28 = vpop.f32.mrf.mxu3 }
 0x116   :  { %v143_v29 = vadd.f32 %v142_v28, %v120_v27 }
 0x118   :  { %v145_v30 = vsub.f32 0.0, %v143_v29 }
 0x11a   :  { %v146_v31 = vmul.f32 1.442695, %v145_v30 }
 0x11c   :  { %188 = vpow2.f32 %v146_v31 }
 0x122   :  { %v189_v32 = vpop.eup %188 }
 0x123   :  { %v148_v33 = vadd.f32 1.0, %v189_v32 }
 0x125   :  { %190 = vrcp.f32 %v148_v33  ;;  %v160_v37 = vand.u32 2147483648, %v148_v33  ;;  %v158_v39 = vand.u32 2147483647, %v148_v33  ;;  %vm154_vm4 = vweird.f32 %v148_v33 }
 0x127   :  { %v161_v41 = vor.u32 1.1754944e-38, %v160_v37  ;;  %vm159_vm7 = vcmp.eq.f32.partialorder %v158_v39, 8.507059e+37 }
 0x12b   :  { %v191_v34 = vpop.eup %190 }
 0x12c   :  { %v150_v35 = vmul.f32 %v191_v34, %v148_v33  ;;  %vm155_vm3 = vweird.f32 %v191_v34 }
 0x12d   :  { %vm156_vm5 = vmor %vm154_vm4, %vm155_vm3 }
 0x12e   :  { %v151_v36 = vsub.f32 1.0, %v150_v35 }
 0x130   :  { %v152_v38 = vmul.f32 %v191_v34, %v151_v36 }
 0x132   :  { %v153_v40 = vadd.f32 %v191_v34, %v152_v38 }
 0x134   :  { %v157_v42 = vsel %vm156_vm5, %v191_v34, %v153_v40 }
 0x135   :  { %v162_v43 = vsel %vm159_vm7, %v161_v41, %v157_v42 }
 0x136   :  { %165 = vst.msk [vmem:[#allocation3] sm:$0x1] %vm164_vm6, %v162_v43 }
 0x137   :  { %176 = dma.vmem_to_hbm [thread:$0]  %s172_s4, 16, %s174_s10, [#allocation4]  }
 0x138   :  { %216 = dma.done.wait [#allocation4], 16  }
 0x139   :  { %217 = vsyncadd [#allocation4], 4294967280 }
 0x13a   :  { %181 = vsyncpa [#allocation4], 1 }

// kernel: mamba_model_forward.2
= control target key start
LH: loop header
LB: loop body
LE: loop exit
PB: predicated region body
PF: predicated region fallthrough
CT: control target
= control target key end

     0   :  { %s2214_s0 = inlined_call_operand.hbm [shape: f32[2,8,32], index: 0, kind: input, shape index: {}]   ;;  %s2215_s1 = inlined_call_operand.hbm [shape: f32[2,2,16,128], index: 1, kind: input, shape index: {}]   ;;  %s2216_s2 = inlined_call_operand.hbm [shape: f32[2,2,384,128], index: 2, kind: input, shape index: {}]   ;;  %s2217_s3 = inlined_call_operand.vmem [shape: f32[2,1,32], index: 3, kind: output, shape index: {}]  }
   0x1   :  { %2227 = sst [smem:[#allocation18_spill]] %s2215_s1 }
   0x2   :  { %2228 = sst [smem:[#allocation19_spill]] %s2217_s3 }
   0x3   :  { %8 = vsyncpa [#allocation5], 0 }
   0x4   :  { %10 = vsyncpa [#allocation5 + $0x1], 0 }
   0x5   :  { %11 = vsyncpa [#allocation7], 0 }
   0x6   :  { %13 = vsyncpa [#allocation7 + $0x1], 0  ;;  %s1670_s12 = smov 0   ;;  %s1672_s13 = smov 0  }
   0x7   :  { %s1674_s14 = smov 0   ;;  %s1676_s15 = smov 0  }
   0x8   :  { %s1678_s16 = smov 0   ;;  %s1680_s17 = smov 0  }
   0x9   :  { %s1682_s18 = smov 0   ;;  %s1684_s19 = smov 0  }
   0xa   :  { %s1686_s20 = smov 0   ;;  %s1688_s21 = smov 0  }
   0xb   :  { %s1690_s22 = smov 0  }
   0xc LB: > { %2229 = sst [smem:[#allocation11_spill]] %s1597_s13  ;;  %s28_s23 = sadd.s32 1, %s1625_s20  ;;  %s1633_s22 = sphi %s1690_s22, %s19_s22   ;;  %s1629_s21 = sphi %s1688_s21, %s2266_s21   ;;  %s1625_s20 = sphi %s1686_s20, %s2265_s20   ;;  %s1621_s19 = sphi %s1684_s19, %s2264_s19   ;;  %s1617_s18 = sphi %s1682_s18, %s2263_s18   ;;  %s1613_s17 = sphi %s1680_s17, %s2262_s17   ;;  %s1609_s16 = sphi %s1678_s16, %s2261_s16   ;;  %s1605_s15 = sphi %s1676_s15, %s2260_s15   ;;  %s1601_s14 = sphi %s1674_s14, %s2259_s14   ;;  %s1597_s13 = sphi %s1672_s13, %s2258_s13   ;;  %s1593_s12 = sphi %s1670_s12, %s2254_s12  }
   0xd   : > { %2230 = sst [smem:[#allocation12_spill]] %s1617_s18  ;;  %p46_p0 = scmp.eq.s32.totalorder %s1633_s22, 0 }
   0xe   : > { %2231 = sst [smem:[#allocation13_spill]] %s1621_s19  ;;  %p1727_p1 = scmp.ge.s32.totalorder %s28_s23, 2 }
   0xf   : > { %p73_p2 = scmp.ne.s32.totalorder %s1601_s14, %s1597_s13  ;;  %p79_p3 = scmp.ne.s32.totalorder %s1597_s13, %s1593_s12 }
  0x10   : > { %s2268_s23 = smov (%p1727_p1, %s28_s23), 0  ;;  %p1262_p5 = scmp.lt.s32.totalorder %s1633_s22, 4 }
  0x11   : > { %2233 = sst [smem:[#allocation14_spill]] %s2268_s23  ;;  %p1742_p4 = por %p73_p2, %p46_p0 }
  0x12   : > { %s62_s27 = ssub.s32 %s1625_s20, %s2268_s23  ;;  %s176_s28 = sand.u32 1, %s1633_s22  }
  0x13   : > { %s178_s29 = sand.u32 1, %s1601_s14   ;;  %s1222_s4 = sshll.u32 %s1625_s20, 1 }
  0x14   : > { %s1221_s30 = sshll.u32 %s178_s29, 4  ;;  %s1223_s5 = sshll.u32 %s1629_s21, 2 }
  0x15   : > { %s180_s6 = scalar_lea.vmem [#allocation6], %s1221_s30  ;;  %s185_s8 = sadd.s32 %s1223_s5, %s1222_s4 }
  0x16   : > { %s190_s7 = sshll.u32 %s180_s6, 4  ;;  %s1224_s9 = sshll.u32 %s185_s8, 3  ;;  %s191_s7 = int_to_ptr.vmem [resolvable:$true] %s190_s7 }
  0x17   : > { %p1757_p6 = pnand %p1262_p5, %p1742_p4  ;;  %s2236_s1 = sld [smem:[#allocation18_spill]] }
  0x18   : > { %s1764_s26 = scalar_lea.sflag [#allocation7], %s176_s28  ;;  %s2219_s5 = smov 128  }
  0x19   : > { %s2220_s6 = smov 8   ;;  %s1772_s25 = smul.u32 384, %s178_s29 }
  0x1a   : > { %p1226_p7 = scmp.ge.s32.totalorder %s1633_s22, 1  ;;  %p222_p8 = scmp.lt.s32.totalorder %s1633_s22, 5 }
  0x1b   : > { %s2218_s8 = sadd.s32 4294967295, %s1633_s22   ;;  %s38_s11 = sadd.s32 1, %s1613_s17 }
  0x1c   : > { %p1776_p9 = pnand %p1226_p7, %p222_p8  ;;  %p45_p10 = scmp.ne.s32.totalorder %s1613_s17, %s1609_s16 }
  0x1d   : > { %s187_s30 = scalar_lea.hbm %s2236_s1, %s1224_s9  ;;  %s31_s9 = sadd.s32 1, %s1629_s21 }
  0x1e   : > { %s188_s4 = sshll.u32 %s187_s30, 4  ;;  %s2270_s9 = smov (!%p1727_p1, %s31_s9), %s1629_s21  ;;  %s189_s4 = int_to_ptr.hbm [resolvable:$true] %s188_s4 }
  0x1f   : > { %1258 = dma.hbm_to_vmem [thread:$0]  (!%p1757_p6), %s189_s4, 256, %s191_s7, %s1764_s26, %s2219_s5, %s2219_s5, %s2220_s6  }
  0x20   : > { %p51_p11 = scmp.ne.s32.totalorder %s1609_s16, %s1605_s15  ;;  %p33_p12 = scmp.ge.s32.totalorder %s2270_s9, 2 }
  0x21   : > { %p52_p13 = scmp.eq.s32.totalorder %s2218_s8, 0  ;;  %p1794_p2 = por %p46_p0, %p45_p10 }
  0x22   : > { %s157_s7 = sand.u32 1, %s1613_s17   ;;  %s2272_s9 = smov (%p33_p12, %s2270_s9), 0 }
  0x23   : > { %2239 = sst [smem:[#allocation15_spill]] %s2272_s9  ;;  %p1801_p4 = por %p52_p13, %p51_p11 }
  0x24   : > { %p1808_p1 = por %p79_p3, %p52_p13  ;;  %s35_s30 = ssub.s32 %s1629_s21, %s2272_s9 }
  0x25   : > { %p36_p0 = scmp.eq.s32.totalorder %s35_s30, 0  ;;  %s63_s4 = sor.u32 %s62_s27, %s35_s30 }
  0x26   : > { %s2241_s15 = scalar_select %p1808_p1, 1, 0 }
  0x27   : > { %p64_p7 = scmp.eq.s32.totalorder %s63_s4, 0  ;;  %s1219_s8 = sshll.u32 %s157_s7, 3 }
  0x28   : > { %2242 = sst [smem:[#allocation16_spill]] %s2241_s15  ;;  %s2244_s6 = sadd.s32 1, %s1601_s14 }
  0x29   : > { %s1818_s5 = scalar_select %p36_p0, %s1613_s17, %s38_s11  }
  0x2a   : > { %s1823_s1 = scalar_select %p64_p7, %s1601_s14, %s2244_s6  }
  0x2b   : > { %2243 = sst [smem:[#allocation17_spill]] %s1818_s5  ;;  %s1220_s12 = sshll.u32 %s1629_s21, 3 }
  0x2c   : > { %s165_s19 = scalar_lea.hbm %s2214_s0, %s1220_s12  ;;  %s161_s15 = scalar_lea.vmem [#allocation4], %s1219_s8 }
  0x2d   : > { %s169_s13 = sshll.u32 %s161_s15, 4  ;;  %s167_s9 = sshll.u32 %s165_s19, 4  ;;  %s170_s13 = int_to_ptr.vmem [resolvable:$true] %s169_s13  ;;  %s168_s9 = int_to_ptr.hbm [resolvable:$true] %s167_s9 }
  0x2e   : > { %p1253_p3 = pnand %p1262_p5, %p1794_p2  ;;  %s1243_s27 = smul.u32 48, %s1625_s20 }
  0x2f   : > { %s204_s11 = scalar_lea.vmem [#allocation8], %s1772_s25  ;;  %s1244_s6 = smul.u32 96, %s1629_s21 }
  0x30   : > { %s214_s30 = sshll.u32 %s204_s11, 4  ;;  %s158_s4 = scalar_lea.sflag [#allocation5], %s157_s7  ;;  %s215_s30 = int_to_ptr.vmem [resolvable:$true] %s214_s30 }
  0x31   : > { %1255 = dma.hbm_to_vmem [thread:$0]  (!%p1253_p3), %s168_s9, 128, %s170_s13, %s158_s4  }
  0x32   : > { %s209_s23 = sadd.s32 %s1244_s6, %s1243_s27  ;;  %s2245_s15 = smov 8  }
  0x33   : > { %s1225_s5 = sshll.u32 %s209_s23, 3  ;;  %s2246_s29 = smov 128  }
  0x34   : > { %s211_s8 = scalar_lea.hbm %s2216_s2, %s1225_s5  ;;  %226 = sbr.rel (%p1776_p9) target bundleno = 2001 (0x7d1), region = 32 }
  0x35   : > { %s212_s19 = sshll.u32 %s211_s8, 4  ;;  %s228_s13 = sand.u32 (!%p1776_p9), 1, %s1609_s16   ;;  %s213_s19 = int_to_ptr.hbm [resolvable:$true] %s212_s19 }
  0x36   : > { %1261 = dma.hbm_to_vmem [thread:$0]  (!%p1757_p6), %s213_s19, 6144, %s215_s30, %s1764_s26, %s2246_s29, %s2246_s29, %s2245_s15  }
  0x37   : > { %s1227_s25 = sshll.u32 (!%p1776_p9), %s228_s13, 3  ;;  %s229_s23 = scalar_lea.sflag (!%p1776_p9), [#allocation5], %s228_s13 }
  0x38   : > { %s232_s9 = scalar_lea.vmem (!%p1776_p9), [#allocation4], %s1227_s25 }
  0x39   : > { %1584 = dma.done.wait (%p1801_p4), %s229_s23, 128  }
  0x3a   : > { %1586 = vsyncadd (%p1801_p4), %s229_s23, 4294967168  ;;  %s2247_s10 = sadd.s32 4294967295, %s1633_s22   ;;  %s2248_s5 = sld [smem:[#allocation11_spill]] }
  0x3b   : > { %s238_s12 = sand.u32 1, %s2247_s10  }
  0x3c   : > { %s239_s28 = scalar_lea.sflag [#allocation7], %s238_s12 }
  0x40   : > { %s240_s26 = sand.u32 1, %s2248_s5  }
  0x41   : > { %s1228_s27 = sshll.u32 %s240_s26, 4 }
  0x42   : > { %s1855_s11 = scalar_lea.vmem [#allocation6], %s1228_s27 }
  0x43   : > { %1588 = dma.done.wait (%p1808_p1), %s239_s28, 6400  }
  0x44   : > { %1590 = vsyncadd (%p1808_p1), %s239_s28, 4294960896  ;;  %s2250_s30 = sld [smem:[#allocation13_spill]]  ;;  %s1245_s6 = smul.u32 384, %s240_s26 }
  0x45   : > { %s2251_s3 = sld [smem:[#allocation19_spill]] }
  0x46   : > { %s1869_s8 = scalar_lea.vmem [#allocation8], %s1245_s6  ;;  %s2252_s19 = sld [smem:[#allocation12_spill]] }
  0x4a   : > { %p284_p5 = scmp.lt.s32.totalorder %s2250_s30, 1 }
  0x4c   : > { %s2274_s30 = smov (!%p284_p5, %s2250_s30), 1  ;;  %p1229_p6 = scmp.ne.s32.totalorder %s2252_s19, 0 }
  0x4d   : > { %s286_s18 = scalar_lea.vmem %s2251_s3, %s2274_s30 }
  0x4e   : > { %290 = sbr.rel (%p1229_p6) target bundleno = 85 (0x55), region = 48 }
  0x53   : > { %v291_v0 = vld [vmem:[%s232_s9] sm:$0xff]  ;;  %vm292_vm0 = vcmask 261120  }
  0x54   : > { %293 = vst.msk [vmem:[#allocation2] sm:$0xff] %vm292_vm0, %v291_v0 }
  0x55 PF: > { %vm345_vm1 = vcmask 261120   ;;  %v1637_v3 = vmov 32.0   ;;  %v299_v15 = vld [vmem:[%s1869_s8 + $0x18] sm:$0xff]  ;;  %v298_v16 = vld [vmem:[%s1869_s8 + $0x10] sm:$0xff]  ;;  %v297_v17 = vld [vmem:[%s1869_s8 + $0x8] sm:$0xff]  ;;  %vm402_vm6 = vcmask 64512  }
  0x56   : > { %1395 = vrcp.f32 %v1637_v3  ;;  %394 = vmatpush.msra.mxu0 %v299_v15  ;;  %v296_v18 = vld [vmem:[%s1869_s8] sm:$0xff]  ;;  %v341_v37 = vld [vmem:[%s1869_s8 + $0x168] sm:$0xff]  ;;  %v342_v38 = vld [vmem:[%s1869_s8 + $0x170] sm:$0xff]  ;;  %vm477_vm11 = vcmask 523264   ;;  %vm506_vm12 = vcmask 1041408   ;;  %vm502_vm13 = vcmask 15360  }
  0x57   : > { %v1883_v27 = vld [vmem:[%s1855_s11] sm:$0xff]  ;;  %v343_v39 = vld [vmem:[%s1869_s8 + $0x178] sm:$0xff]  ;;  %v333_v45 = vld [vmem:[%s1869_s8 + $0x128] sm:$0xff]  ;;  %s1638_s15 = smov 126   ;;  %s1639_s29 = smov 110  }
  0x58   : > { %395 = vmatpush.msra.mxu0 %v298_v16  ;;  %v375_v29 = vperm.slane %v1883_v27, 0  ;;  %v377_v32 = vperm.slane %v1883_v27, 1  ;;  %v340_v35 = vld [vmem:[%s1869_s8 + $0x160] sm:$0xff]  ;;  %v338_v42 = vld [vmem:[%s1869_s8 + $0x150] sm:$0xf]  ;;  %v335_v43 = vld [vmem:[%s1869_s8 + $0x138] sm:$0xff] }
  0x59   : > { %v334_v44 = vld [vmem:[%s1869_s8 + $0x130] sm:$0xff]  ;;  %489 = vmatpush.msra.mxu2 %v335_v43  ;;  %v444_v46 = vperm.slane %v338_v42, 0  ;;  %v332_v47 = vld [vmem:[%s1869_s8 + $0x120] sm:$0xff]  ;;  %v448_v48 = vperm.slane %v338_v42, 1  ;;  %v331_v50 = vld [vmem:[%s1869_s8 + $0x118] sm:$0xff]  ;;  %v446_v52 = vperm.slane %v1883_v27, 4 }
  0x5a   : > { %396 = vmatpush.msra.mxu0 %v297_v17  ;;  %v451_v53 = vperm.slane %v338_v42, 2  ;;  %v330_v54 = vld [vmem:[%s1869_s8 + $0x110] sm:$0xff]  ;;  %v329_v56 = vld [vmem:[%s1869_s8 + $0x108] sm:$0xff]  ;;  %v454_v59 = vperm.slane %v338_v42, 3  ;;  %v328_v60 = vld [vmem:[%s1869_s8 + $0x100] sm:$0xff]  ;;  %s1648_s13 = smov 64  }
  0x5b   : > { %v344_v1 = vld [vmem:[#allocation2] sm:$0xff]  ;;  %490 = vmatpush.msra.mxu2 %v334_v44 }
  0x5c   : > { %v346_v2 = vsel %vm345_vm1, %v344_v1, 0.0  ;;  %v1396_v4 = vpop.eup %1395  ;;  %397 = vmatpush.msra.mxu0 %v296_v18  ;;  %v339_v18 = vld [vmem:[%s1869_s8 + $0x158] sm:$0x3] }
  0x5d   : > { %347 = vadd.xlane.f32.xlu0 %v346_v2  ;;  %v350_v5 = vmul.f32 32.0, %v1396_v4  ;;  %vm354_vm2 = vweird.f32 %v1396_v4  ;;  %491 = vmatpush.msra.mxu2 %v333_v45  ;;  %v1647_v45 = vmov 5  }
  0x5e   : > { %1236 = vmatpush.msk.msra.mxu3 %vm506_vm12, %v339_v18 }
  0x5f   : > { %v351_v6 = vsub.f32 1.0, %v350_v5  ;;  %492 = vmatpush.msra.mxu2 %v332_v47 }
  0x61   : > { %v352_v7 = vmul.f32 %v1396_v4, %v351_v6  ;;  %493 = vmatpush.msra.mxu2 %v331_v50 }
  0x63   : > { %v353_v8 = vadd.f32 %v1396_v4, %v352_v7  ;;  %494 = vmatpush.msra.mxu2 %v330_v54 }
  0x65   : > { %v1873_v9 = vsel %vm354_vm2, %v1396_v4, %v353_v8  ;;  %495 = vmatpush.msra.mxu2 %v329_v56 }
  0x67   : > { %496 = vmatpush.msra.mxu2 %v328_v60 }
  0xd0   : > { %v348_v10 = vpop.xlane.xlu0 %347 }
  0xd1   : > { %v356_v11 = vmul.f32 %v1873_v9, %v348_v10 }
  0xd3   : > { %v357_v12 = vsub.f32 %v344_v1, %v356_v11 }
  0xd5   : > { %v358_v13 = vmul.f32 %v357_v12, %v357_v12 }
  0xd7   : > { %v359_v14 = vsel %vm345_vm1, %v358_v13, 0.0 }
  0xd8   : > { %360 = vadd.xlane.f32.xlu0 %v359_v14 }
 0x14b   : > { %v361_v19 = vpop.xlane.xlu0 %360 }
 0x14c   : > { %v362_v20 = vmul.f32 %v361_v19, %v1873_v9 }
 0x14e   : > { %v363_v21 = vadd.f32 1e-05, %v362_v20 }
 0x150   : > { %1397 = vrsqrt.f32 %v363_v21  ;;  %vm370_vm4 = vweird.f32 %v363_v21 }
 0x156   : > { %v1398_v22 = vpop.eup %1397 }
 0x157   : > { %v365_v23 = vmul.f32 %v1398_v22, %v363_v21  ;;  %vm371_vm3 = vweird.f32 %v1398_v22 }
 0x158   : > { %vm372_vm5 = vmor %vm370_vm4, %vm371_vm3  ;;  %vm655_vm3 = vcmask 516096  }
 0x159   : > { %v366_v24 = vmul.f32 %v1398_v22, %v365_v23  ;;  %v1641_v23 = vmov 0  }
 0x15b   : > { %v367_v25 = vmul.f32 0.5, %v366_v24  ;;  %v1642_v24 = vmov 1  }
 0x15d   : > { %v368_v26 = vsub.f32 1.5, %v367_v25 }
 0x15f   : > { %v369_v28 = vmul.f32 %v1398_v22, %v368_v26 }
 0x161   : > { %v373_v30 = vsel %vm372_vm5, %v1398_v22, %v369_v28  ;;  %v1640_v22 = vmov 4   ;;  %v1643_v28 = vmov 3  }
 0x162   : > { %v374_v31 = vmul.f32 %v373_v30, %v357_v12  ;;  %1373 = vset.pattern.permute.xlu0 %v1640_v22  ;;  %v1644_v30 = vmov 2  }
 0x164   : > { %v376_v33 = vmul.f32 %v375_v29, %v374_v31 }
 0x166   : > { %v378_v34 = vadd.f32 %v377_v32, %v376_v33 }
 0x168   : > { %1230 = vmatmul.msk.f32.vlgmr.msra.gmra.mxu0 %vm345_vm1, %v378_v34 }
 0x1e5   : > { %v1889_v36 = vpop.f32.mrf.mxu0 }
 0x1e6   : > { %430 = vmatpush.msra.mxu1 %v1889_v36  ;;  %v955_v29 = vsub.f32 0.0, %v1889_v36 }
 0x1e7   : > { %1231 = vmatmul.msk.f32.vlgmr.msra.gmra.mxu1 %vm402_vm6, %v340_v35  ;;  %v1645_v35 = vmov 6  }
 0x1e8   : > { %v956_v31 = vmul.f32 1.442695, %v955_v29 }
 0x1ef   : > { %1232 = vmatmul.msk.f32.gmra.mxu1 %vm402_vm6, %v341_v37  ;;  %v501_v37 = vperm.slane %v1883_v27, 5 }
 0x1f7   : > { %1233 = vmatmul.msk.f32.gmra.mxu1 %vm402_vm6, %v342_v38  ;;  %v1646_v38 = vmov 7  }
 0x1ff   : > { %1234 = vmatmul.msk.f32.gmra.mxu1 %vm402_vm6, %v343_v39 }
 0x264   : > { %v432_v40 = vpop.f32.mrf.mxu1 }
 0x265   : > { %v445_v51 = vmul.f32 %v444_v46, %v432_v40 }
 0x267   : > { %v447_v57 = vadd.f32 %v446_v52, %v445_v51 }
 0x26c   : > { %v435_v41 = vpop.f32.mrf.mxu1 }
 0x26d   : > { %v449_v55 = vmul.f32 %v448_v48, %v435_v41 }
 0x26f   : > { %v450_v61 = vadd.f32 %v449_v55, %v447_v57 }
 0x274   : > { %v438_v49 = vpop.f32.mrf.mxu1 }
 0x275   : > { %v452_v58 = vmul.f32 %v451_v53, %v438_v49 }
 0x277   : > { %v453_v63 = vadd.f32 %v452_v58, %v450_v61 }
 0x27c   : > { %v441_v62 = vpop.f32.mrf.mxu1 }
 0x27d   : > { %v455_v0 = vmul.f32 %v454_v59, %v441_v62 }
 0x27f   : > { %v456_v1 = vadd.f32 %v455_v0, %v453_v63  ;;  %v1955_v63 = vld [vmem:[%s1869_s8 + $0x140] sm:$0xff] }
 0x281   : > { %v457_v2 = vsub.f32 0.0, %v456_v1 }
 0x283   : > { %v458_v3 = vmul.f32 1.442695, %v457_v2 }
 0x285   : > { %1399 = vpow2.f32 %v458_v3 }
 0x28b   : > { %v1400_v4 = vpop.eup %1399 }
 0x28c   : > { %v460_v5 = vadd.f32 1.0, %v1400_v4 }
 0x28e   : > { %1401 = vrcp.f32 %v460_v5  ;;  %v472_v10 = vand.u32 2147483648, %v460_v5  ;;  %v470_v12 = vand.u32 2147483647, %v460_v5  ;;  %vm466_vm8 = vweird.f32 %v460_v5 }
 0x28f   : > { %1403 = vpow2.f32 %v956_v31 }
 0x290   : > { %v473_v14 = vor.u32 1.1754944e-38, %v472_v10  ;;  %vm471_vm10 = vcmp.eq.f32.partialorder %v470_v12, 8.507059e+37 }
 0x294   : > { %v1402_v6 = vpop.eup %1401 }
 0x295   : > { %v462_v7 = vmul.f32 %v1402_v6, %v460_v5  ;;  %vm467_vm7 = vweird.f32 %v1402_v6  ;;  %v1404_v33 = vpop.eup %1403 }
 0x296   : > { %vm468_vm9 = vmor %vm466_vm8, %vm467_vm7  ;;  %v958_v34 = vadd.f32 1.0, %v1404_v33  ;;  %vm1094_vm8 = vcmask 253952  }
 0x297   : > { %v463_v8 = vsub.f32 1.0, %v462_v7 }
 0x298   : > { %1405 = vrcp.f32 %v958_v34  ;;  %v970_v50 = vand.u32 2147483648, %v958_v34  ;;  %vm964_vm15 = vweird.f32 %v958_v34  ;;  %v968_v52 = vand.u32 2147483647, %v958_v34 }
 0x299   : > { %v464_v11 = vmul.f32 %v1402_v6, %v463_v8 }
 0x29a   : > { %v971_v54 = vor.u32 1.1754944e-38, %v970_v50  ;;  %vm969_vm2 = vcmp.eq.f32.partialorder %v968_v52, 8.507059e+37 }
 0x29b   : > { %v465_v13 = vadd.f32 %v1402_v6, %v464_v11 }
 0x29d   : > { %v469_v15 = vsel %vm468_vm9, %v1402_v6, %v465_v13 }
 0x29e   : > { %v474_v16 = vsel %vm471_vm10, %v473_v14, %v469_v15  ;;  %v1406_v39 = vpop.eup %1405 }
 0x29f   : > { %v1905_v17 = vmul.f32 %v474_v16, %v456_v1  ;;  %v960_v41 = vmul.f32 %v1406_v39, %v958_v34  ;;  %vm965_vm14 = vweird.f32 %v1406_v39 }
 0x2a0   : > { %vm966_vm0 = vmor %vm964_vm15, %vm965_vm14 }
 0x2a1   : > { %1235 = vmatmul.msk.f32.vlgmr.msra.gmra.mxu2 %vm477_vm11, %v1905_v17  ;;  %v961_v43 = vsub.f32 1.0, %v960_v41 }
 0x2a3   : > { %v962_v46 = vmul.f32 %v1406_v39, %v961_v43 }
 0x2a5   : > { %v963_v48 = vadd.f32 %v1406_v39, %v962_v46 }
 0x2a7   : > { %v967_v53 = vsel %vm966_vm0, %v1406_v39, %v963_v48 }
 0x2a8   : > { %v972_v55 = vsel %vm969_vm2, %v971_v54, %v967_v53 }
 0x2a9   : > { %v974_v57 = vmul.f32 %v972_v55, %v1889_v36 }
 0x324   : > { %v498_v19 = vpop.f32.mrf.mxu2 }
 0x325   : > { %539 = vrot.lane.b32.xlu1 %v498_v19, %s1638_s15  ;;  %1237 = vmatmul.msk.f32.vlgmr.msra.gmra.mxu3 %vm502_vm13, %v498_v19 }
 0x32d   : > { %574 = vrot.lane.b32.xlu1 %v498_v19, %s1639_s29 }
 0x397   : > { %v540_v20 = vpop.permute.xlu1 %539 }
 0x398   : > { %542 = vxpose.xlu2.b32.start.end [1/1] (short) (narrow) %v540_v20, 16 }
 0x39f   : > { %v575_v21 = vpop.permute.xlu1 %574 }
 0x3a0   : > { %577 = vxpose.xlu1.b32.start.end [1/1] (short) (narrow) %v575_v21, 16 }
 0x3a8   : > { %v527_v40 = vpop.f32.mrf.mxu3 }
 0x3a9   : > { %v528_v42 = vadd.f32 %v527_v40, %v501_v37 }
 0x3ab   : > { %v531_v44 = vand.u32 2147483647, %v528_v42  ;;  %v530_v36 = vmax.f32 %v528_v42, 0.0 }
 0x3ad   : > { %v532_v47 = vsub.f32 0.0, %v531_v44 }
 0x3af   : > { %v533_v49 = vmul.f32 1.442695, %v532_v47 }
 0x3b1   : > { %1407 = vpow2.f32 %v533_v49 }
 0x3b7   : > { %v1408_v56 = vpop.eup %1407 }
 0x3b8   : > { %v535_v58 = vadd.f32 1.0, %v1408_v56 }
 0x3ba   : > { %1409 = vlog2.f32 %v535_v58 }
 0x3c0   : > { %v1410_v59 = vpop.eup %1409 }
 0x3c1   : > { %v537_v60 = vmul.f32 0.6931472, %v1410_v59 }
 0x3c3   : > { %v1950_v61 = vadd.f32 %v537_v60, %v530_v36 }
 0x3c5   : > { %v610_v62 = vperm.slane %v1950_v61, 0  ;;  %v1966_v2 = vmul.f32 %v1950_v61, %v1905_v17  ;;  %v657_v15 = vperm.slane %v1950_v61, 1  ;;  %v699_v20 = vperm.slane %v1950_v61, 2 }
 0x3c6   : > { %v783_v31 = vperm.slane %v1950_v61, 4  ;;  %v867_v59 = vperm.slane %v1950_v61, 6 }
 0x3c7   : > { %v611_v0 = vmul.f32 %v610_v62, %v1955_v63  ;;  %v629_v4 = vperm.slane %v1966_v2, 0  ;;  %v658_v19 = vmul.f32 %v657_v15, %v1955_v63  ;;  %v674_v29 = vperm.slane %v1966_v2, 1 }
 0x3c8   : > { %v784_v39 = vmul.f32 %v783_v31, %v1955_v63  ;;  %v716_v41 = vperm.slane %v1966_v2, 2  ;;  %v758_v49 = vperm.slane %v1966_v2, 3  ;;  %v800_v56 = vperm.slane %v1966_v2, 4 }
 0x3c9   : > { %v613_v1 = vmul.f32 1.442695, %v611_v0  ;;  %v660_v21 = vmul.f32 1.442695, %v658_v19 }
 0x3cb   : > { %1411 = vpow2.f32 %v613_v1 }
 0x3cc   : > { %1413 = vpow2.f32 %v660_v21 }
 0x3d1   : > { %v1412_v5 = vpop.eup %1411 }
 0x3d2   : > { %v617_v7 = vmul.f32 0.0, %v1412_v5  ;;  %v1414_v33 = vpop.eup %1413  ;;  %v868_v5 = vmul.f32 %v867_v59, %v1955_v63 }
 0x3f3   : > { %1368 = vset.pattern.permute.xlu1 %v1642_v24 }
 0x3fa   : > { %1367 = vset.pattern.permute.xlu2 %v1641_v23 }
 0x431   : > { %v558_v25 = vpop.trf.xlu2 }
 0x432   : > { %793 = vperm.xlu0 %1373, %v558_v25   ;;  %621 = vperm.xlu2 %1367, %v558_v25  }
 0x433   : > { %667 = vperm.xlu1 %1368, %v558_v25  }
 0x439   : > { %v1913_v26 = vpop.trf.xlu2 }
 0x43a   : > { %1374 = vset.pattern.permute.xlu0 %v1643_v28 }
 0x43b   : > { %1369 = vset.pattern.permute.xlu1 %v1644_v30  ;;  %755 = vperm.xlu0 %1374, %v1913_v26  }
 0x43c   : > { %709 = vperm.xlu1 %1369, %v558_v25  }
 0x443   : > { %1375 = vset.pattern.permute.xlu0 %v1640_v22 }
 0x444   : > { %1370 = vset.pattern.permute.xlu1 %v1642_v24  ;;  %797 = vperm.xlu0 %1375, %v1913_v26   ;;  %v1922_v32 = vpop.trf.xlu1 }
 0x445   : > { %671 = vperm.xlu1 %1370, %v1913_v26   ;;  %636 = vperm.xlu2 %1367, %v1922_v32  }
 0x44c   : > { %1377 = vset.pattern.permute.xlu0 %v1645_v35  ;;  %v594_v51 = vpop.trf.xlu1 }
 0x44d   : > { %1371 = vset.pattern.permute.xlu1 %v1644_v30  ;;  %877 = vperm.xlu0 %1377, %v558_v25  }
 0x44e   : > { %713 = vperm.xlu1 %1371, %v1913_v26   ;;  %1379 = vset.pattern.permute.xlu2 %v1642_v24 }
 0x44f   : > { %680 = vperm.xlu2 %1379, %v1922_v32  }
 0x455   : > { %1378 = vset.pattern.permute.xlu0 %v1646_v38 }
 0x456   : > { %1372 = vset.pattern.permute.xlu1 %v1643_v28  ;;  %919 = vperm.xlu0 %1378, %v558_v25  }
 0x457   : > { %751 = vperm.xlu1 %1372, %v558_v25   ;;  %1382 = vset.pattern.permute.xlu2 %v1643_v28 }
 0x458   : > { %764 = vperm.xlu2 %1382, %v1922_v32  }
 0x45e   : > { %1380 = vset.pattern.permute.xlu0 %v1644_v30 }
 0x45f   : > { %1376 = vset.pattern.permute.xlu1 %v1647_v45  ;;  %722 = vperm.xlu0 %1380, %v1922_v32  }
 0x460   : > { %839 = vperm.xlu1 %1376, %v1913_v26   ;;  %1383 = vset.pattern.permute.xlu2 %v1640_v22 }
 0x461   : > { %806 = vperm.xlu2 %1383, %v1922_v32  }
 0x467   : > { %1381 = vset.pattern.permute.xlu0 %v1647_v45 }
 0x468   : > { %1392 = vset.pattern.permute.xlu1 %v1645_v35  ;;  %835 = vperm.xlu0 %1381, %v558_v25  }
 0x469   : > { %1385 = vset.pattern.permute.xlu2 %v1645_v35  ;;  %894 = vperm.xlu1 %1392, %v594_v51  }
 0x46a   : > { %890 = vperm.xlu2 %1385, %v1922_v32  }
 0x470   : > { %848 = vperm.xlu0 %1381, %v1922_v32  }
 0x471   : > { %976 = vrot.lane.b32.xlu1 %v974_v57, %s1648_s13 }
 0x472   : > { %881 = vperm.xlu2 %1385, %v1913_v26  }
 0x478   : > { %1384 = vset.pattern.permute.xlu0 %v1641_v23  ;;  %v700_v23 = vmul.f32 %v699_v20, %v1955_v63 }
 0x479   : > { %626 = vperm.xlu0 %1384, %v1913_v26  }
 0x47a   : > { %1386 = vset.pattern.permute.xlu2 %v1646_v38 }
 0x47b   : > { %923 = vperm.xlu2 %1386, %v1913_v26   ;;  %v741_v26 = vperm.slane %v1950_v61, 3 }
 0x481   : > { %641 = vperm.xlu0 %1384, %v594_v51  }
 0x483   : > { %1387 = vset.pattern.permute.xlu2 %v1642_v24 }
 0x484   : > { %684 = vperm.xlu2 %1387, %v594_v51  }
 0x489   : > { %1389 = vset.pattern.permute.xlu0 %v1643_v28  ;;  %v702_v28 = vmul.f32 1.442695, %v700_v23 }
 0x48a   : > { %768 = vperm.xlu0 %1389, %v594_v51  }
 0x48b   : > { %1415 = vpow2.f32 %v702_v28 }
 0x48c   : > { %1388 = vset.pattern.permute.xlu2 %v1644_v30  ;;  %v622_v3 = vpop.permute.xlu2 %621  ;;  %v742_v30 = vmul.f32 %v741_v26, %v1955_v63 }
 0x48d   : > { %726 = vperm.xlu2 %1388, %v594_v51   ;;  %v630_v6 = vmul.f32 %v629_v4, %v622_v3 }
 0x48f   : > { %v632_v8 = vadd.f32 %v630_v6, %v617_v7 }
 0x491   : > { %v664_v35 = vmul.f32 %v1414_v33, %v632_v8  ;;  %v1416_v44 = vpop.eup %1415 }
 0x492   : > { %1393 = vset.pattern.permute.xlu0 %v1646_v38 }
 0x493   : > { %932 = vperm.xlu0 %1393, %v1922_v32  }
 0x495   : > { %1390 = vset.pattern.permute.xlu2 %v1640_v22 }
 0x496   : > { %810 = vperm.xlu2 %1390, %v594_v51  }
 0x49e   : > { %1391 = vset.pattern.permute.xlu2 %v1647_v45  ;;  %v786_v45 = vmul.f32 1.442695, %v784_v39 }
 0x49f   : > { %852 = vperm.xlu2 %1391, %v594_v51   ;;  %v637_v10 = vpop.permute.xlu2 %636 }
 0x4a0   : > { %v1973_v11 = vmul.f32 %v637_v10, %v632_v8  ;;  %v870_v8 = vmul.f32 1.442695, %v868_v5  ;;  %v337_v10 = vld [vmem:[%s1869_s8 + $0x148] sm:$0xff] }
 0x4a1   : > { %v612_v28 = vmul.f32 %v610_v62, %v337_v10 }
 0x4a3   : > { %v615_v39 = vmul.f32 1.442695, %v612_v28 }
 0x4a4   : > { %v794_v12 = vpop.permute.xlu0 %793 }
 0x4a5   : > { %v668_v13 = vpop.permute.xlu1 %667  ;;  %v801_v36 = vmul.f32 %v800_v56, %v794_v12 }
 0x4a6   : > { %v675_v32 = vmul.f32 %v674_v29, %v668_v13  ;;  %v842_v13 = vperm.slane %v1966_v2, 5 }
 0x4a7   : > { %1394 = vset.pattern.permute.xlu2 %v1646_v38  ;;  %v744_v38 = vmul.f32 1.442695, %v742_v30  ;;  %v884_v30 = vperm.slane %v1966_v2, 6 }
 0x4a8   : > { %936 = vperm.xlu2 %1394, %v594_v51   ;;  %v2007_v40 = vadd.f32 %v675_v32, %v664_v35  ;;  %v825_v51 = vperm.slane %v1950_v61, 5 }
 0x4a9   : > { %v1976_v14 = vpop.permute.xlu2 %680  ;;  %1417 = vpow2.f32 %v744_v38 }
 0x4aa   : > { %v706_v46 = vmul.f32 %v1416_v44, %v2007_v40  ;;  %1419 = vpow2.f32 %v786_v45  ;;  %v826_v58 = vmul.f32 %v825_v51, %v1955_v63 }
 0x4ac   : > { %v828_v3 = vmul.f32 1.442695, %v826_v58 }
 0x4ad   : > { %v1979_v16 = vpop.permute.xlu0 %755 }
 0x4ae   : > { %v710_v18 = vpop.permute.xlu1 %709  ;;  %1421 = vpow2.f32 %v828_v3 }
 0x4af   : > { %v717_v43 = vmul.f32 %v716_v41, %v710_v18  ;;  %v1418_v52 = vpop.eup %1417  ;;  %1423 = vpow2.f32 %v870_v8  ;;  %v909_v8 = vperm.slane %v1950_v61, 7 }
 0x4b0   : > { %v1420_v60 = vpop.eup %1419  ;;  %1425 = vpow2.f32 %v615_v39 }
 0x4b1   : > { %v2015_v47 = vadd.f32 %v717_v43, %v706_v46  ;;  %v659_v43 = vmul.f32 %v657_v15, %v337_v10 }
 0x4b2   : > { %v1985_v22 = vpop.permute.xlu2 %764 }
 0x4b3   : > { %v748_v54 = vmul.f32 %v1418_v52, %v2015_v47  ;;  %v662_v62 = vmul.f32 1.442695, %v659_v43  ;;  %v701_v52 = vmul.f32 %v699_v20, %v337_v10  ;;  %v827_v20 = vmul.f32 %v825_v51, %v337_v10 }
 0x4b4   : > { %v1422_v18 = vpop.eup %1421  ;;  %v910_v51 = vmul.f32 %v909_v8, %v1955_v63 }
 0x4b5   : > { %v1424_v33 = vpop.eup %1423  ;;  %1427 = vpow2.f32 %v662_v62 }
 0x4b6   : > { %v1990_v24 = vpop.permute.xlu0 %797 }
 0x4b7   : > { %v1992_v25 = vpop.permute.xlu1 %671 }
 0x4bb   : > { %v2002_v34 = vpop.permute.xlu2 %806 }
 0x4bf   : > { %v878_v37 = vpop.permute.xlu0 %877 }
 0x4c0   : > { %v2010_v42 = vpop.permute.xlu1 %713  ;;  %v885_v35 = vmul.f32 %v884_v30, %v878_v37  ;;  %v743_v37 = vmul.f32 %v741_v26, %v337_v10  ;;  %v676_v26 = vmul.f32 %v674_v29, %v1992_v25 }
 0x4c1   : > { %v718_v61 = vmul.f32 %v716_v41, %v2010_v42 }
 0x4c4   : > { %v2017_v48 = vpop.permute.xlu2 %890 }
 0x4c8   : > { %v2020_v50 = vpop.permute.xlu0 %919 }
 0x4c9   : > { %v752_v53 = vpop.permute.xlu1 %751 }
 0x4ca   : > { %v759_v55 = vmul.f32 %v758_v49, %v752_v53  ;;  %v1426_v53 = vpop.eup %1425 }
 0x4cb   : > { %v618_v58 = vmul.f32 0.0, %v1426_v53  ;;  %v1428_v5 = vpop.eup %1427  ;;  %v912_v53 = vmul.f32 1.442695, %v910_v51 }
 0x4cc   : > { %v2027_v57 = vadd.f32 %v759_v55, %v748_v54  ;;  %v2037_v6 = vpop.permute.xlu2 %881  ;;  %v704_v54 = vmul.f32 1.442695, %v701_v52 }
 0x4ce   : > { %v790_v0 = vmul.f32 %v1420_v60, %v2027_v57  ;;  %1429 = vpow2.f32 %v704_v54 }
 0x4d0   : > { %v2034_v1 = vadd.f32 %v801_v36, %v790_v0  ;;  %v746_v36 = vmul.f32 1.442695, %v743_v37  ;;  %v785_v0 = vmul.f32 %v783_v31, %v337_v10  ;;  %v830_v31 = vmul.f32 1.442695, %v827_v20 }
 0x4d1   : > { %v723_v7 = vpop.permute.xlu0 %722 }
 0x4d2   : > { %v832_v23 = vmul.f32 %v1422_v18, %v2034_v1  ;;  %1431 = vpow2.f32 %v746_v36  ;;  %v729_v39 = vmul.f32 %v723_v7, %v2015_v47  ;;  %v926_v47 = vperm.slane %v1966_v2, 7  ;;  %v320_v2 = vld [vmem:[%s1869_s8 + $0xc0] sm:$0xff] }
 0x4d4   : > { %v1430_v28 = vpop.eup %1429 }
 0x4d5   : > { %v2041_v21 = vpop.permute.xlu2 %923 }
 0x4d8   : > { %v1432_v62 = vpop.eup %1431 }
 0x4da   : > { %v836_v19 = vpop.permute.xlu0 %835 }
 0x4db   : > { %v843_v12 = vmul.f32 %v842_v13, %v836_v19  ;;  %v687_v19 = vmul.f32 %v1976_v14, %v2007_v40  ;;  %v646_v14 = vsel %vm477_vm11, %v1973_v11, 0.0  ;;  %v760_v11 = vmul.f32 %v758_v49, %v1979_v16 }
 0x4dd   : > { %v2049_v32 = vadd.f32 %v843_v12, %v832_v23  ;;  %v869_v12 = vmul.f32 %v867_v59, %v337_v10  ;;  %v689_v40 = vsel %vm477_vm11, %v687_v19, 0.0 }
 0x4de   : > { %v685_v46 = vpop.permute.xlu2 %684 }
 0x4df   : > { %v874_v38 = vmul.f32 %v1424_v33, %v2049_v32  ;;  %v872_v59 = vmul.f32 1.442695, %v869_v12  ;;  %v327_v12 = vld [vmem:[%s1869_s8 + $0xf8] sm:$0xff] }
 0x4e0   : > { %991 = vmatpush.msrb.mxu3 %v327_v12 }
 0x4e1   : > { %v2056_v44 = vadd.f32 %v885_v35, %v874_v38  ;;  %v911_v35 = vmul.f32 %v909_v8, %v337_v10  ;;  %v840_v8 = vpop.permute.xlu1 %839 }
 0x4e2   : > { %v2058_v45 = vpop.permute.xlu0 %848 }
 0x4e7   : > { %v727_v60 = vpop.permute.xlu2 %726 }
 0x4eb   : > { %v627_v55 = vpop.permute.xlu0 %626 }
 0x4ec   : > { %v631_v15 = vmul.f32 %v629_v4, %v627_v55  ;;  %v788_v4 = vmul.f32 1.442695, %v785_v0 }
 0x4ee   : > { %v633_v3 = vadd.f32 %v631_v15, %v618_v58  ;;  %1433 = vpow2.f32 %v788_v4  ;;  %v771_v58 = vmul.f32 %v1985_v22, %v2027_v57  ;;  %v731_v15 = vsel %vm477_vm11, %v729_v39, 0.0 }
 0x4ef   : > { %1435 = vpow2.f32 %v830_v31  ;;  %v813_v22 = vmul.f32 %v2002_v34, %v2034_v1 }
 0x4f0   : > { %v665_v18 = vmul.f32 %v1428_v5, %v633_v3  ;;  %v811_v41 = vpop.permute.xlu2 %810  ;;  %1437 = vpow2.f32 %v872_v59  ;;  %v802_v5 = vmul.f32 %v800_v56, %v1990_v24  ;;  %v773_v56 = vsel %vm477_vm11, %v771_v58, 0.0 }
 0x4f1   : > { %v815_v59 = vsel %vm477_vm11, %v813_v22, 0.0 }
 0x4f2   : > { %v678_v23 = vadd.f32 %v676_v26, %v665_v18 }
 0x4f3   : > { %v642_v33 = vpop.permute.xlu0 %641 }
 0x4f4   : > { %v688_v38 = vmul.f32 %v685_v46, %v678_v23  ;;  %v707_v25 = vmul.f32 %v1430_v28, %v678_v23  ;;  %v645_v29 = vmul.f32 %v642_v33, %v633_v3  ;;  %v914_v46 = vmul.f32 1.442695, %v911_v35  ;;  %v1434_v3 = vpop.eup %1433  ;;  %v326_v23 = vld [vmem:[%s1869_s8 + $0xf0] sm:$0xff] }
 0x4f5   : > { %v1436_v28 = vpop.eup %1435  ;;  %v886_v33 = vmul.f32 %v884_v30, %v2037_v6  ;;  %992 = vmatpush.msrb.mxu3 %v326_v23 }
 0x4f6   : > { %v690_v10 = vsel %vm477_vm11, %v688_v38, 0.0  ;;  %v720_v43 = vadd.f32 %v718_v61, %v707_v25  ;;  %v647_v63 = vsel %vm477_vm11, %v645_v29, 0.0  ;;  %1439 = vpow2.f32 %v914_v46  ;;  %v1438_v34 = vpop.eup %1437  ;;  %v325_v61 = vld [vmem:[%s1869_s8 + $0xe8] sm:$0xff] }
 0x4f7   : > { %v691_v52 = vadd.f32 %v690_v10, %v689_v40  ;;  %v648_v42 = vadd.f32 %v647_v63, %v646_v14  ;;  %1441 = vpow2.f32 %v912_v53  ;;  %v844_v38 = vmul.f32 %v842_v13, %v840_v8  ;;  %993 = vmatpush.msrb.mxu3 %v325_v61 }
 0x4f8   : > { %v730_v54 = vmul.f32 %v727_v60, %v720_v43  ;;  %v749_v37 = vmul.f32 %v1432_v62, %v720_v43  ;;  %v324_v43 = vld [vmem:[%s1869_s8 + $0xe0] sm:$0xff]  ;;  %v855_v62 = vmul.f32 %v2058_v45, %v2049_v32  ;;  %v927_v32 = vmul.f32 %v926_v47, %v2020_v50 }
 0x4f9   : > { %v692_v7 = vrot.slane %v691_v52, 4  ;;  %v649_v55 = vrot.slane %v648_v42, 4  ;;  %v853_v10 = vpop.permute.xlu2 %852  ;;  %994 = vmatpush.msrb.mxu3 %v324_v43  ;;  %v928_v50 = vmul.f32 %v926_v47, %v2041_v21 }
 0x4fa   : > { %v732_v36 = vsel %vm477_vm11, %v730_v54, 0.0  ;;  %v762_v0 = vadd.f32 %v760_v11, %v749_v37  ;;  %v323_v54 = vld [vmem:[%s1869_s8 + $0xd8] sm:$0xff] }
 0x4fb   : > { %v693_v16 = vadd.f32 %v692_v7, %v691_v52  ;;  %v733_v49 = vadd.f32 %v732_v36, %v731_v15  ;;  %v650_v60 = vadd.f32 %v649_v55, %v648_v42  ;;  %v897_v36 = vmul.f32 %v2017_v48, %v2056_v44  ;;  %995 = vmatpush.msrb.mxu3 %v323_v54 }
 0x4fc   : > { %v791_v20 = vmul.f32 %v1434_v3, %v762_v0  ;;  %v769_v57 = vpop.permute.xlu0 %768  ;;  %v1440_v6 = vpop.eup %1439  ;;  %v857_v3 = vsel %vm477_vm11, %v855_v62, 0.0 }
 0x4fd   : > { %v694_v26 = vrot.slane %v693_v16, 2  ;;  %v734_v18 = vrot.slane %v733_v49, 4  ;;  %v651_v19 = vrot.slane %v650_v60, 2  ;;  %v772_v4 = vmul.f32 %v769_v57, %v762_v0  ;;  %v1442_v63 = vpop.eup %1441  ;;  %v322_v0 = vld [vmem:[%s1869_s8 + $0xd0] sm:$0xff] }
 0x4fe   : > { %v804_v24 = vadd.f32 %v802_v5, %v791_v20  ;;  %v916_v58 = vmul.f32 %v1442_v63, %v2056_v44  ;;  %v895_v5 = vpop.permute.xlu1 %894  ;;  %v321_v44 = vld [vmem:[%s1869_s8 + $0xc8] sm:$0xff]  ;;  %996 = vmatpush.msrb.mxu3 %v322_v0  ;;  %v899_v23 = vsel %vm477_vm11, %v897_v36, 0.0 }
 0x4ff   : > { %v695_v1 = vadd.f32 %v694_v26, %v693_v16  ;;  %v735_v31 = vadd.f32 %v734_v18, %v733_v49  ;;  %v652_v35 = vadd.f32 %v651_v19, %v650_v60  ;;  %v774_v51 = vsel %vm477_vm11, %v772_v4, 0.0 }
 0x500   : > { %v814_v25 = vmul.f32 %v811_v41, %v804_v24  ;;  %v833_v29 = vmul.f32 %v1436_v28, %v804_v24  ;;  %v775_v14 = vadd.f32 %v774_v51, %v773_v56  ;;  %v929_v19 = vadd.f32 %v927_v32, %v916_v58  ;;  %997 = vmatpush.msrb.mxu3 %v321_v44 }
 0x501   : > { %v696_v30 = vrot.slane %v695_v1, 1  ;;  %v736_v40 = vrot.slane %v735_v31, 2  ;;  %v653_v39 = vrot.slane %v652_v35, 1 }
 0x502   : > { %v816_v52 = vsel %vm477_vm11, %v814_v25, 0.0  ;;  %v846_v13 = vadd.f32 %v844_v38, %v833_v29  ;;  %v776_v41 = vrot.slane %v775_v14, 4  ;;  %998 = vmatpush.msrb.mxu3 %v320_v2  ;;  %v311_v2 = vld [vmem:[%s1869_s8 + $0x78] sm:$0xff] }
 0x503   : > { %v697_v42 = vadd.f32 %v696_v30, %v695_v1  ;;  %v737_v46 = vadd.f32 %v736_v40, %v735_v31  ;;  %v817_v53 = vadd.f32 %v816_v52, %v815_v59  ;;  %v654_v11 = vadd.f32 %v653_v39, %v652_v35 }
 0x504   : > { %v856_v37 = vmul.f32 %v853_v10, %v846_v13  ;;  %v875_v7 = vmul.f32 %v1438_v34, %v846_v13  ;;  %v777_v55 = vadd.f32 %v776_v41, %v775_v14  ;;  %v937_v34 = vpop.permute.xlu2 %936 }
 0x505   : > { %698 = vst.msk [vmem:[#allocation3 + $0x1] sm:$0x1] %vm655_vm3, %v697_v42  ;;  %v738_v45 = vrot.slane %v737_v46, 1  ;;  %v818_v15 = vrot.slane %v817_v53, 4  ;;  %v933_v48 = vpop.permute.xlu0 %932 }
 0x506   : > { %656 = vst.msk [vmem:[#allocation3] sm:$0x1] %vm655_vm3, %v654_v11  ;;  %v858_v16 = vsel %vm477_vm11, %v856_v37, 0.0  ;;  %v778_v49 = vrot.slane %v777_v55, 2  ;;  %v888_v60 = vadd.f32 %v886_v33, %v875_v7  ;;  %v939_v33 = vmul.f32 %v933_v48, %v929_v19  ;;  %v314_v19 = vld [vmem:[%s1869_s8 + $0x90] sm:$0xff] }
 0x507   : > { %v739_v20 = vadd.f32 %v738_v45, %v737_v46  ;;  %v819_v22 = vadd.f32 %v818_v15, %v817_v53  ;;  %v859_v57 = vadd.f32 %v858_v16, %v857_v3  ;;  %v952_v11 = vperm.slane %v1883_v27, 6  ;;  %v1447_v45 = vld [vmem:[#allocation2] sm:$0xff] }
 0x508   : > { %v779_v8 = vadd.f32 %v778_v49, %v777_v55  ;;  %v898_v26 = vmul.f32 %v895_v5, %v888_v60  ;;  %v917_v18 = vmul.f32 %v1440_v6, %v888_v60  ;;  %v941_v29 = vsel %vm477_vm11, %v939_v33, 0.0  ;;  %v977_v55 = vpop.permute.xlu1 %976  ;;  %v303_v49 = vld [vmem:[%s1869_s8 + $0x38] sm:$0xff]  ;;  %v302_v60 = vld [vmem:[%s1869_s8 + $0x30] sm:$0xff]  ;;  %v300_v5 = vld [vmem:[%s1869_s8 + $0x20] sm:$0xff] }
 0x509   : > { %740 = vst.msk [vmem:[#allocation3 + $0x2] sm:$0x1] %vm655_vm3, %v739_v20  ;;  %v820_v4 = vrot.slane %v819_v22, 2  ;;  %v860_v12 = vrot.slane %v859_v57, 4  ;;  %v953_v54 = vmul.f32 %v952_v11, %v1905_v17  ;;  %1045 = vmatpush.msrb.mxu0 %v303_v49  ;;  %v319_v20 = vld [vmem:[%s1869_s8 + $0xb8] sm:$0xff] }
 0x50a   : > { %v780_v21 = vrot.slane %v779_v8, 1  ;;  %v900_v47 = vsel %vm477_vm11, %v898_v26, 0.0  ;;  %v930_v28 = vadd.f32 %v928_v50, %v917_v18  ;;  %v301_v50 = vld [vmem:[%s1869_s8 + $0x28] sm:$0xff]  ;;  %1054 = vmatpush.msrb.mxu1 %v319_v20  ;;  %v315_v18 = vld [vmem:[%s1869_s8 + $0x98] sm:$0xff] }
 0x50b   : > { %v821_v24 = vadd.f32 %v820_v4, %v819_v22  ;;  %v861_v56 = vadd.f32 %v860_v12, %v859_v57  ;;  %v901_v1 = vadd.f32 %v900_v47, %v899_v23  ;;  %1046 = vmatpush.msrb.mxu0 %v302_v60  ;;  %v318_v22 = vld [vmem:[%s1869_s8 + $0xb0] sm:$0xff]  ;;  %v317_v57 = vld [vmem:[%s1869_s8 + $0xa8] sm:$0xff]  ;;  %v312_v12 = vld [vmem:[%s1869_s8 + $0x80] sm:$0xff] }
 0x50c   : > { %v781_v31 = vadd.f32 %v780_v21, %v779_v8  ;;  %v940_v35 = vmul.f32 %v937_v34, %v930_v28  ;;  %1055 = vmatpush.msrb.mxu1 %v318_v22  ;;  %v316_v8 = vld [vmem:[%s1869_s8 + $0xa0] sm:$0xff]  ;;  %v313_v4 = vld [vmem:[%s1869_s8 + $0x88] sm:$0xff]  ;;  %v307_v34 = vld [vmem:[%s1869_s8 + $0x58] sm:$0xff] }
 0x50d   : > { %v822_v51 = vrot.slane %v821_v24, 1  ;;  %v862_v61 = vrot.slane %v861_v56, 2  ;;  %v902_v38 = vrot.slane %v901_v1, 4  ;;  %1047 = vmatpush.msrb.mxu0 %v301_v50  ;;  %v309_v28 = vld [vmem:[%s1869_s8 + $0x68] sm:$0xff] }
 0x50e   : > { %782 = vst.msk [vmem:[#allocation3 + $0x3] sm:$0x1] %vm655_vm3, %v781_v31  ;;  %v942_v25 = vsel %vm477_vm11, %v940_v35, 0.0  ;;  %1056 = vmatpush.msrb.mxu1 %v317_v57  ;;  %v1448_v31 = vld [vmem:[%s1855_s11] sm:$0xff] }
 0x50f   : > { %v823_v14 = vadd.f32 %v822_v51, %v821_v24  ;;  %v863_v6 = vadd.f32 %v862_v61, %v861_v56  ;;  %v903_v30 = vadd.f32 %v902_v38, %v901_v1  ;;  %v943_v40 = vadd.f32 %v942_v25, %v941_v29  ;;  %1048 = vmatpush.msrb.mxu0 %v300_v5  ;;  %v308_v24 = vld [vmem:[%s1869_s8 + $0x60] sm:$0xff]  ;;  %v306_v51 = vld [vmem:[%s1869_s8 + $0x50] sm:$0xff] }
 0x510   : > { %1057 = vmatpush.msrb.mxu1 %v316_v8  ;;  %v1025_v35 = vperm.slane %v1448_v31, 2  ;;  %v1027_v25 = vperm.slane %v1448_v31, 3 }
 0x511   : > { %824 = vst.msk [vmem:[#allocation3 + $0x4] sm:$0x1] %vm655_vm3, %v823_v14  ;;  %v864_v59 = vrot.slane %v863_v6, 1  ;;  %v904_v39 = vrot.slane %v903_v30, 2  ;;  %v944_v10 = vrot.slane %v943_v40, 4 }
 0x512   : > { %1058 = vmatpush.msrb.mxu1 %v315_v18 }
 0x513   : > { %v865_v43 = vadd.f32 %v864_v59, %v863_v6  ;;  %v905_v63 = vadd.f32 %v904_v39, %v903_v30  ;;  %v945_v62 = vadd.f32 %v944_v10, %v943_v40  ;;  %v305_v6 = vld [vmem:[%s1869_s8 + $0x48] sm:$0xff]  ;;  %v304_v30 = vld [vmem:[%s1869_s8 + $0x40] sm:$0xff] }
 0x514   : > { %1059 = vmatpush.msrb.mxu1 %v314_v19  ;;  %v295_v40 = vld [vmem:[%s1855_s11 + $0x8] sm:$0xff] }
 0x515   : > { %866 = vst.msk [vmem:[#allocation3 + $0x5] sm:$0x1] %vm655_vm3, %v865_v43  ;;  %v906_v52 = vrot.slane %v905_v63, 1  ;;  %v946_v13 = vrot.slane %v945_v62, 2  ;;  %v1029_v59 = vperm.slane %v295_v40, 0 }
 0x516   : > { %1060 = vmatpush.msrb.mxu1 %v313_v4 }
 0x517   : > { %v907_v41 = vadd.f32 %v906_v52, %v905_v63  ;;  %v947_v42 = vadd.f32 %v946_v13, %v945_v62  ;;  %v1649_v63 = vmov 8.0   ;;  %v1075_v52 = vperm.slane %v1448_v31, 7 }
 0x518   : > { %1061 = vmatpush.msrb.mxu1 %v312_v12 }
 0x519   : > { %908 = vst.msk [vmem:[#allocation3 + $0x6] sm:$0x1] %vm655_vm3, %v907_v41  ;;  %v948_v46 = vrot.slane %v947_v42, 1 }
 0x51a   : > { %1062 = vmatpush.msrb.mxu1 %v311_v2 }
 0x51b   : > { %v949_v53 = vadd.f32 %v948_v46, %v947_v42 }
 0x51d   : > { %950 = vst.msk [vmem:[#allocation3 + $0x7] sm:$0x1] %vm655_vm3, %v949_v53 }
 0x524   : > { %v951_v37 = vld [vmem:[#allocation3] sm:$0xff] }
 0x525   : > { %v954_v7 = vadd.f32 %v953_v54, %v951_v37 }
 0x527   : > { %v979_v58 = vmul.f32 %v977_v55, %v954_v7 }
 0x529   : > { %1238 = vmatmul.msk.f32.vlgmr.msrb.gmra.mxu3 %vm477_vm11, %v979_v58 }
 0x5ac   : > { %v1000_v32 = vpop.f32.mrf.mxu3 }
 0x5ad   : > { %v2142_v15 = vadd.f32 %v1447_v45, %v1000_v32 }
 0x5af   : > { %v1003_v27 = vsel %vm345_vm1, %v2142_v15, 0.0 }
 0x5b0   : > { %1004 = vadd.xlane.f32.xlu2 %v1003_v27 }
 0x623   : > { %v1005_v17 = vpop.xlane.xlu2 %1004 }
 0x624   : > { %v1006_v36 = vmul.f32 %v1005_v17, %v1873_v9 }
 0x626   : > { %v1007_v0 = vsub.f32 %v2142_v15, %v1006_v36 }
 0x628   : > { %v1008_v3 = vmul.f32 %v1007_v0, %v1007_v0 }
 0x62a   : > { %v1009_v16 = vsel %vm345_vm1, %v1008_v3, 0.0 }
 0x62b   : > { %1010 = vadd.xlane.f32.xlu1 %v1009_v16 }
 0x69e   : > { %v1011_v48 = vpop.xlane.xlu1 %1010 }
 0x69f   : > { %v1012_v44 = vmul.f32 %v1011_v48, %v1873_v9  ;;  %v310_v9 = vld [vmem:[%s1869_s8 + $0x70] sm:$0xff] }
 0x6a0   : > { %1063 = vmatpush.msrb.mxu1 %v310_v9 }
 0x6a1   : > { %v1013_v26 = vadd.f32 1e-05, %v1012_v44 }
 0x6a2   : > { %1064 = vmatpush.msrb.mxu1 %v309_v28 }
 0x6a3   : > { %1443 = vrsqrt.f32 %v1013_v26  ;;  %vm1020_vm5 = vweird.f32 %v1013_v26 }
 0x6a4   : > { %1065 = vmatpush.msrb.mxu1 %v308_v24  ;;  %1445 = vrcp.f32 %v1649_v63 }
 0x6a6   : > { %1066 = vmatpush.msrb.mxu1 %v307_v34 }
 0x6a8   : > { %1067 = vmatpush.msrb.mxu1 %v306_v51 }
 0x6a9   : > { %v1444_v23 = vpop.eup %1443 }
 0x6aa   : > { %v1015_v21 = vmul.f32 %v1444_v23, %v1013_v26  ;;  %vm1021_vm4 = vweird.f32 %v1444_v23  ;;  %1068 = vmatpush.msrb.mxu1 %v305_v6  ;;  %v1446_v62 = vpop.eup %1445 }
 0x6ab   : > { %vm1022_vm6 = vmor %vm1020_vm5, %vm1021_vm4  ;;  %v1087_v42 = vmul.f32 8.0, %v1446_v62  ;;  %vm1091_vm7 = vweird.f32 %v1446_v62 }
 0x6ac   : > { %v1016_v47 = vmul.f32 %v1444_v23, %v1015_v21  ;;  %1069 = vmatpush.msrb.mxu1 %v304_v30 }
 0x6ad   : > { %v1088_v11 = vsub.f32 1.0, %v1087_v42 }
 0x6ae   : > { %v1017_v33 = vmul.f32 0.5, %v1016_v47 }
 0x6af   : > { %v1089_v7 = vmul.f32 %v1446_v62, %v1088_v11 }
 0x6b0   : > { %v1018_v56 = vsub.f32 1.5, %v1017_v33 }
 0x6b1   : > { %v1090_v32 = vadd.f32 %v1446_v62, %v1089_v7 }
 0x6b2   : > { %v1019_v1 = vmul.f32 %v1444_v23, %v1018_v56 }
 0x6b3   : > { %v1092_v17 = vsel %vm1091_vm7, %v1446_v62, %v1090_v32 }
 0x6b4   : > { %v1023_v61 = vsel %vm1022_vm6, %v1444_v23, %v1019_v1 }
 0x6b5   : > { %v1024_v38 = vmul.f32 %v1023_v61, %v1007_v0 }
 0x6b7   : > { %v1026_v29 = vmul.f32 %v1025_v35, %v1024_v38 }
 0x6b9   : > { %v1028_v14 = vadd.f32 %v1027_v25, %v1026_v29 }
 0x6bb   : > { %1239 = vmatmul.msk.f32.vlgmr.msrb.gmra.mxu0 %vm345_vm1, %v1028_v14 }
 0x738   : > { %v1050_v39 = vpop.f32.mrf.mxu0 }
 0x739   : > { %v1051_v10 = vadd.f32 %v1050_v39, %v1029_v59 }
 0x73b   : > { %v1053_v43 = vmax.f32 %v1051_v10, 0.0 }
 0x73d   : > { %1070 = vmatmul.f32.vlgmr.msrb.gmra.mxu1 %v1053_v43 }
 0x7ba   : > { %v1071_v13 = vpop.f32.mrf.mxu1 }
 0x7bb   : > { %v1074_v41 = vadd.f32 %v1071_v13, %v1028_v14 }
 0x7bd   : > { %v1076_v46 = vadd.f32 %v1075_v52, %v1074_v41 }
 0x7bf   : > { %v1077_v53 = vadd.f32 %v1076_v46, %v2142_v15 }
 0x7c1   : > { %1078 = vst.msk [vmem:[#allocation2] sm:$0xff] %vm345_vm1, %v1077_v53  ;;  %v1079_v54 = vsel %vm345_vm1, %v1077_v53, 0.0 }
 0x7c2   : > { %v1080_v37 = vrot.slane %v1079_v54, 4 }
 0x7c4   : > { %v1081_v55 = vadd.f32 %v1080_v37, %v1079_v54 }
 0x7c6   : > { %v1082_v58 = vrot.slane %v1081_v55, 2 }
 0x7c8   : > { %v1083_v45 = vadd.f32 %v1082_v58, %v1081_v55 }
 0x7ca   : > { %v1084_v27 = vrot.slane %v1083_v45, 1 }
 0x7cc   : > { %v1085_v36 = vadd.f32 %v1084_v27, %v1083_v45 }
 0x7ce   : > { %v1093_v0 = vmul.f32 %v1092_v17, %v1085_v36 }
 0x7d0   : > { %1095 = vst.msk [vmem:[%s286_s18] sm:$0x1] %vm1094_vm8, %v1093_v0 }
 0x7d1 PF: > { %s19_s22 = sadd.s32 1, %s1633_s22   ;;  %s2254_s12 = sld [smem:[#allocation11_spill]] }
 0x7d2   : > { %p16_p8 = scmp.ge.s32.totalorder %s19_s22, 6   ;;  %s2255_s10 = sld [smem:[#allocation17_spill]] }
 0x7d3   : > { %s2256_s5 = sld [smem:[#allocation14_spill]]  ;;  %s2258_s13 = smov %s1601_s14 }
 0x7d4   : > { %s2257_s7 = sld [smem:[#allocation15_spill]]  ;;  %s2259_s14 = smov %s1823_s1 }
 0x7d5   : > { %s2260_s15 = smov %s1609_s16  ;;  %s2261_s16 = smov %s1613_s17 }
 0x7d6   : > { %s2263_s18 = smov %s1625_s20  ;;  %s2264_s19 = smov %s1629_s21 }
 0x7d7   :  { %18 = sbr.rel (!%p16_p8) target bundleno = 12 (0xc), region = 100 }
 0x7d8   : > { %s2262_s17 = smov %s2255_s10 }
 0x7d9   : > { %s2265_s20 = smov %s2256_s5 }
 0x7da   : > { %s2266_s21 = smov %s2257_s7 }
 0x7dc   :  { %1113 = vsyncpa [#allocation5], 1 }
 0x7dd   :  { %1115 = vsyncpa [#allocation5 + $0x1], 1 }
 0x7de   :  { %1116 = vsyncpa [#allocation7], 1 }
 0x7df   :  { %1118 = vsyncpa [#allocation7 + $0x1], 1 }

</bundles_post_ra>
